<compile_context>
chip_gen: v7x
topology: tpu7x:2x2x1
jax: 0.10.0
libtpu: 0.0.40
codegen_flags: <defaults>
</compile_context>

<pallas_src>
import functools
import math

import jax
import jax.numpy as jnp
from jax import lax
from jax.experimental import pallas as pl
from jax.experimental.pallas import tpu as pltpu

NC = 8                 # classes
NA = 3                 # anchors per scale
NO = NC + 5            # outputs per anchor (13)
NDET = NA * NO         # detect head width (39)


# ----------------------------------------------------------------------------
# Pallas kernel: one lane-dense matmul (tap-stacked K) + folded BN + SiLU,
# optionally fused with a Detect 1x1-conv head.
# ----------------------------------------------------------------------------
def _conv_silu_kernel(*refs, fuse_detect, write_act):
    src_ref, w_ref, scale_ref, shift_ref = refs[:4]
    pos = 4
    if fuse_detect:
        wd_ref, bd_ref = refs[pos], refs[pos + 1]
        pos += 2
    out_refs = refs[pos:]

    # Single MXU matmul: bf16 operands, f32 accumulation.
    # src_ref block: (1, m, kpad) -> (m, kpad);  w_ref: (kpad, cout)
    acc = jnp.dot(src_ref[0], w_ref[...], preferred_element_type=jnp.float32)

    y = acc * scale_ref[...] + shift_ref[...]          # folded BatchNorm (f32)
    y = y * jax.nn.sigmoid(y)                          # SiLU
    y_bf = y.astype(jnp.bfloat16)

    o = 0
    if write_act:
        out_refs[o][0, :, :] = y_bf                    # bf16 activation (real cout lanes)
        o += 1
    if fuse_detect:                                    # fused Detect 1x1 conv
        d = jnp.dot(y_bf, wd_ref[...], preferred_element_type=jnp.float32) + bd_ref[...]
        out_refs[o][0, :, :] = d.astype(jnp.bfloat16)  # bf16, exactly na*no lanes


# ----------------------------------------------------------------------------
# Wrapper glue
# ----------------------------------------------------------------------------
def _packed_taps(x, stride, ho, wo, kpad):
    """Tap-stacked K slab: for every OUTPUT pixel, the 3x3 neighbourhood's
    channels concatenated along the lane dim, zero-padded to kpad (mult of 128).
    Works for odd H/W at stride 2 (slices always yield exactly ho/wo rows)."""
    b, h, w, c = x.shape
    xp = jnp.pad(x, ((0, 0), (1, 1), (1, 1), (0, 0)))
    taps = []
    for ki in range(3):
        for kj in range(3):
            if stride == 1:
                t = xp[:, ki:ki + ho, kj:kj + wo, :]
            else:  # stride == 2
                t = xp[:, ki:ki + 2 * ho - 1:2, kj:kj + 2 * wo - 1:2, :]
            taps.append(t)
    s = jnp.concatenate(taps, axis=-1)                       # (B, ho, wo, 9*C)
    s = jnp.pad(s, ((0, 0), (0, 0), (0, 0), (0, kpad - 9 * c)))
    return s.reshape(b, ho * wo, kpad)


def _pick_row_tile(ho, wo, kpad, budget=6 << 20):
    """Largest row tile th (divisor of ho) whose double-buffered src block fits
    `budget` bytes, keeping th*wo a multiple of 8 unless the whole output is a
    single tile.  Bounds per-step VMEM at realistic resolutions (v7x: 64 MiB)."""
    cands = [t for t in range(1, ho + 1)
             if ho % t == 0 and ((t * wo) % 8 == 0 or t == ho)]
    fits = [t for t in cands if 2 * 2 * t * wo * kpad <= budget]
    return max(fits) if fits else min(cands)


def _vmem_limit(blocks):
    """Scoped-VMEM limit from the actual double-buffered per-step footprint."""
    per_step = sum(math.prod(s) * jnp.dtype(d).itemsize for s, d in blocks)
    need = 2 * per_step + (2 << 20)          # 2 pipeline buffers + headroom
    return int(min(64 << 20, max(16 << 20, need)))


def conv_block(x, cp, stride, det=None, *, write_act=True):
    """yolov7 `Conv` (3x3 Conv2d(bias=False, pad=1) + BN + SiLU), optionally
    fused with one Detect-scale 1x1 conv head.  x: (B, H, W, cin) bf16."""
    b, h, w, _ = x.shape
    ho = (h - 1) // stride + 1
    wo = (w - 1) // stride + 1
    kpad, cout = cp["w_packed"].shape

    src = _packed_taps(x, stride, ho, wo, kpad)              # (B, ho*wo, kpad) bf16
    th = _pick_row_tile(ho, wo, kpad)
    n_rt = ho // th
    m = th * wo

    in_specs = [
        pl.BlockSpec((1, m, kpad), lambda bi, ri: (bi, ri, 0)),   # row-tiled src
        pl.BlockSpec((kpad, cout), lambda bi, ri: (0, 0)),        # packed weights
        pl.BlockSpec((1, cout), lambda bi, ri: (0, 0)),           # BN scale
        pl.BlockSpec((1, cout), lambda bi, ri: (0, 0)),           # BN shift
    ]
    inputs = [src, cp["w_packed"], cp["scale"], cp["shift"]]
    blocks = [((1, m, kpad), jnp.bfloat16), ((kpad, cout), jnp.bfloat16),
              ((1, cout), jnp.float32), ((1, cout), jnp.float32)]

    fuse = det is not None
    if fuse:
        ndet = det["w"].shape[1]
        in_specs += [pl.BlockSpec((cout, ndet), lambda bi, ri: (0, 0)),
                     pl.BlockSpec((1, ndet), lambda bi, ri: (0, 0))]
        inputs += [det["w"], det["b"]]
        blocks += [((cout, ndet), jnp.bfloat16), ((1, ndet), jnp.float32)]

    out_shape, out_specs = [], []
    if write_act:
        out_shape.append(jax.ShapeDtypeStruct((b, ho * wo, cout), jnp.bfloat16))
        out_specs.append(pl.BlockSpec((1, m, cout), lambda bi, ri: (bi, ri, 0)))
        blocks.append(((1, m, cout), jnp.bfloat16))
    if fuse:
        out_shape.append(jax.ShapeDtypeStruct((b, ho * wo, ndet), jnp.bfloat16))
        out_specs.append(pl.BlockSpec((1, m, ndet), lambda bi, ri: (bi, ri, 0)))
        blocks.append(((1, m, ndet), jnp.bfloat16))

    kernel = functools.partial(_conv_silu_kernel, fuse_detect=fuse,
                               write_act=write_act)
    single = len(out_shape) == 1
    outs = pl.pallas_call(
        kernel,
        grid=(b, n_rt),
        in_specs=in_specs,
        out_specs=out_specs[0] if single else tuple(out_specs),
        out_shape=out_shape[0] if single else tuple(out_shape),
        compiler_params=pltpu.CompilerParams(
            dimension_semantics=("parallel", "parallel"),
            vmem_limit_bytes=_vmem_limit(blocks)),
    )(*inputs)

    if single:
        outs = (outs,)
    y = det_out = None
    idx = 0
    if write_act:
        y = outs[idx].reshape(b, ho, wo, cout)
        idx += 1
    if fuse:
        det_out = outs[idx]
    return y, det_out, ho, wo


def _finish_detect(det_flat, ho, wo):
    """Apply the torch view/permute only at the end; output f32 like the module."""
    b = det_flat.shape[0]
    d = det_flat.reshape(b, ho, wo, NA, NO).astype(jnp.float32)
    # torch: x.view(bs, na, no, ny, nx).permute(0, 1, 3, 4, 2)
    return d.transpose(0, 3, 1, 2, 4)


def model_forward(x_nchw, params):
    """forward_once (training mode): returns list of (bs, na, ny, nx, no)."""
    x = jnp.transpose(x_nchw, (0, 2, 3, 1)).astype(jnp.bfloat16)   # NCHW -> NHWC
    x1, _, _, _ = conv_block(x, params["conv1"], 1)
    x2, det0, h2, w2 = conv_block(x1, params["conv2"], 2, params["det0"])
    # conv3's activation feeds nothing but its own detect head -> no HBM writeback
    _, det1, h3, w3 = conv_block(x2, params["conv3"], 2, params["det1"],
                                 write_act=False)
    return [_finish_detect(det0, h2, w2), _finish_detect(det1, h3, w3)]


# ----------------------------------------------------------------------------
# Parameters: raw torch-layout params + one-time prep into kernel layout
# ----------------------------------------------------------------------------
def build_raw_params(n_channels):
    key = jax.random.PRNGKey(0)
    ks = list(jax.random.split(key, 8))

    def conv_params(kidx, cin, cout):
        kw_, kg, km, kv, kb = jax.random.split(ks[kidx], 5)
        return dict(
            w=0.1 * jax.random.normal(kw_, (cout, cin, 3, 3), jnp.float32),
            gamma=1.0 + 0.1 * jax.random.normal(kg, (cout,), jnp.float32),
            beta=0.05 * jax.random.normal(kb, (cout,), jnp.float32),
            mean=0.02 * jax.random.normal(km, (cout,), jnp.float32),
            var=jnp.abs(1.0 + 0.1 * jax.random.normal(kv, (cout,), jnp.float32)),
        )

    def head_params(kidx, cin, stride_px):
        # bias init per Model._initialize_biases
        bias = jnp.zeros((NA, NO), jnp.float32)
        bias = bias.at[:, 4].add(math.log(8.0 / (640.0 / stride_px) ** 2))
        bias = bias.at[:, 5:].add(math.log(0.6 / (NC - 0.99)))
        return dict(
            w=0.05 * jax.random.normal(ks[kidx], (NA * NO, cin, 1, 1), jnp.float32),
            b=bias.reshape(-1),
        )

    return dict(
        conv1=conv_params(0, n_channels, 16),   # stride 1
        conv2=conv_params(1, 16, 32),           # stride 2
        conv3=conv_params(2, 32, 64),           # stride 2
        det0=head_params(3, 32, 2.0),
        det1=head_params(4, 64, 4.0),
    )


def prep_params(raw):
    eps = 1e-3                                  # initialize_weights: bn.eps = 1e-3

    def prep_conv(p):
        cout, cin = p["w"].shape[:2]
        k_real = 9 * cin
        kpad = ((k_real + 127) // 128) * 128    # tap-stacked K, padded to 128
        # rows ordered (ki*3 + kj)*cin + c  -- must match _packed_taps concat order
        w2 = jnp.transpose(p["w"], (2, 3, 1, 0)).reshape(k_real, cout)
        w2 = jnp.pad(w2, ((0, kpad - k_real), (0, 0)))
        s = p["gamma"] / jnp.sqrt(p["var"] + eps)
        sh = p["beta"] - p["mean"] * s
        return dict(w_packed=w2.astype(jnp.bfloat16),
                    scale=s.reshape(1, cout),
                    shift=sh.reshape(1, cout))

    def prep_det(p):
        cin = p["w"].shape[1]
        w2d = p["w"].reshape(NA * NO, cin).T                  # (cin, 39)
        return dict(w=w2d.astype(jnp.bfloat16),
                    b=p["b"].reshape(1, NA * NO))

    return dict(
        conv1=prep_conv(raw["conv1"]),
        conv2=prep_conv(raw["conv2"]),
        conv3=prep_conv(raw["conv3"]),
        det0=prep_det(raw["det0"]),
        det1=prep_det(raw["det1"]),
    )


# ----------------------------------------------------------------------------
# Pure-JAX reference (lax.conv from raw torch-layout weights, same bf16 casts)
# ----------------------------------------------------------------------------
def _ref_conv_bn_silu(x_bf, p, stride):
    w_hwio = jnp.transpose(p["w"].astype(jnp.bfloat16), (2, 3, 1, 0))
    y = lax.conv_general_dilated(
        x_bf, w_hwio, (stride, stride), [(1, 1), (1, 1)],
        dimension_numbers=("NHWC", "HWIO", "NHWC"),
        preferred_element_type=jnp.float32)
    s = p["gamma"] / jnp.sqrt(p["var"] + 1e-3)
    y = y * s + (p["beta"] - p["mean"] * s)
    y = y * jax.nn.sigmoid(y)
    return y.astype(jnp.bfloat16)


def _ref_detect(f_bf, p):
    b, hh, ww, cin = f_bf.shape
    w2d = p["w"].reshape(NA * NO, cin).astype(jnp.bfloat16).T
    y = jnp.dot(f_bf.reshape(b * hh * ww, cin), w2d,
                preferred_element_type=jnp.float32) + p["b"]
    return y.reshape(b, hh, ww, NA, NO).transpose(0, 3, 1, 2, 4)


def ref_forward(x_nchw, raw):
    x = jnp.transpose(x_nchw, (0, 2, 3, 1)).astype(jnp.bfloat16)
    x1 = _ref_conv_bn_silu(x, raw["conv1"], 1)
    x2 = _ref_conv_bn_silu(x1, raw["conv2"], 2)
    x3 = _ref_conv_bn_silu(x2, raw["conv3"], 2)
    return [_ref_detect(x2, raw["det0"]), _ref_detect(x3, raw["det1"])]


if __name__ == "__main__":
    B, C, H, W = 2, 4, 16, 16
    x = jax.random.normal(jax.random.PRNGKey(0), (B, C, H, W), jnp.float32)

    raw = build_raw_params(C)
    params = prep_params(raw)

    fwd = jax.jit(model_forward)
    outs = jax.block_until_ready(fwd(x, params))

    refs = ref_forward(x, raw)
    assert outs[0].shape == (B, NA, 8, 8, NO)
    assert outs[1].shape == (B, NA, 4, 4, NO)
    for o, r in zip(outs, refs):
        assert bool(jnp.all(jnp.isfinite(o)))
        max_err = float(jnp.max(jnp.abs(o - r)))
        assert jnp.allclose(o, r, atol=2e-2, rtol=2e-2), max_err

    print("KERNEL_OK")
</pallas_src>

<mosaic_0001>
module attributes {stable_mosaic.version = 11 : i64} {
  func.func @_conv_silu_kernel(%arg0: i32, %arg1: i32, %arg2: memref<1x256x128xbf16, #tpu.memory_space<vmem>>, %arg3: memref<128x16xbf16, #tpu.memory_space<vmem>>, %arg4: memref<1x16xf32, #tpu.memory_space<vmem>>, %arg5: memref<1x16xf32, #tpu.memory_space<vmem>>, %arg6: memref<1x256x16xbf16, #tpu.memory_space<vmem>>) attributes {dimension_semantics = [#tpu.dimension_semantics<parallel>, #tpu.dimension_semantics<parallel>], iteration_bounds = array<i64: 2, 1>, scalar_prefetch = 0 : i64, scratch_operands = 0 : i64, tpu.core_type = #tpu.core_type<tc>, window_params = [{transform_indices = @transform_0, window_bounds = array<i64: 1, 256, 128>}, {pipeline_mode = #tpu.pipeline_mode<synchronous>, transform_indices = @transform_1, window_bounds = array<i64: 128, 16>}, {pipeline_mode = #tpu.pipeline_mode<synchronous>, transform_indices = @transform_2, window_bounds = array<i64: 1, 16>}, {pipeline_mode = #tpu.pipeline_mode<synchronous>, transform_indices = @transform_3, window_bounds = array<i64: 1, 16>}, {transform_indices = @transform_4, window_bounds = array<i64: 1, 256, 16>}]} {
    %c0 = arith.constant 0 : index
    %c0_0 = arith.constant 0 : index
    %c0_1 = arith.constant 0 : index
    %0 = vector.load %arg2[%c0, %c0_0, %c0_1] : memref<1x256x128xbf16, #tpu.memory_space<vmem>>, vector<1x256x128xbf16>
    %1 = vector.shape_cast %0 : vector<1x256x128xbf16> to vector<256x128xbf16>
    %c0_2 = arith.constant 0 : index
    %c0_3 = arith.constant 0 : index
    %2 = vector.load %arg3[%c0_2, %c0_3] : memref<128x16xbf16, #tpu.memory_space<vmem>>, vector<128x16xbf16>
    %cst = arith.constant dense<0.000000e+00> : vector<256x16xf32>
    %3 = tpu.matmul %1, %2, %cst {dimension_numbers = #tpu.dot_dimension_numbers<[1], [0], [0], [1], [0, 0, 1, 1], [], []>} : vector<256x128xbf16>, vector<128x16xbf16>, vector<256x16xf32> -> vector<256x16xf32>
    %c0_4 = arith.constant 0 : index
    %c0_5 = arith.constant 0 : index
    %4 = vector.load %arg4[%c0_4, %c0_5] : memref<1x16xf32, #tpu.memory_space<vmem>>, vector<1x16xf32>
    %5 = vector.broadcast %4 : vector<1x16xf32> to vector<256x16xf32>
    %6 = arith.mulf %3, %5 : vector<256x16xf32>
    %c0_6 = arith.constant 0 : index
    %c0_7 = arith.constant 0 : index
    %7 = vector.load %arg5[%c0_6, %c0_7] : memref<1x16xf32, #tpu.memory_space<vmem>>, vector<1x16xf32>
    %8 = vector.broadcast %7 : vector<1x16xf32> to vector<256x16xf32>
    %9 = arith.addf %6, %8 : vector<256x16xf32>
    %10 = arith.negf %9 : vector<256x16xf32>
    %11 = math.exp %10 : vector<256x16xf32>
    %cst_8 = arith.constant 1.000000e+00 : f32
    %12 = vector.broadcast %cst_8 : f32 to vector<256x16xf32>
    %13 = arith.addf %12, %11 : vector<256x16xf32>
    %14 = arith.divf %12, %13 : vector<256x16xf32>
    %15 = arith.mulf %9, %14 : vector<256x16xf32>
    %16 = arith.truncf %15 : vector<256x16xf32> to vector<256x16xbf16>
    %c0_9 = arith.constant 0 : index
    %c0_10 = arith.constant 0 : index
    %c0_11 = arith.constant 0 : index
    %17 = vector.load %arg6[%c0_9, %c0_10, %c0_11] : memref<1x256x16xbf16, #tpu.memory_space<vmem>>, vector<1x256x16xbf16>
    %18 = vector.shape_cast %17 : vector<1x256x16xbf16> to vector<256x16xbf16>
    %19 = vector.shape_cast %16 : vector<256x16xbf16> to vector<1x256x16xbf16>
    tpu.vector_store %arg6[%c0_9, %c0_10, %c0_11], %19 {strides = array<i32>} : memref<1x256x16xbf16, #tpu.memory_space<vmem>>, vector<1x256x16xbf16>,
    return
  }
  func.func @transform_0(%arg0: i32, %arg1: i32) -> (i32, i32, i32) {
    %c0_i32 = arith.constant 0 : i32
    %c0_i32_0 = arith.constant 0 : i32
    return %arg0, %arg1, %c0_i32 : i32, i32, i32
  }
  func.func @transform_1(%arg0: i32, %arg1: i32) -> (i32, i32) {
    %c0_i32 = arith.constant 0 : i32
    %c0_i32_0 = arith.constant 0 : i32
    %c0_i32_1 = arith.constant 0 : i32
    return %c0_i32, %c0_i32_0 : i32, i32
  }
  func.func @transform_2(%arg0: i32, %arg1: i32) -> (i32, i32) {
    %c0_i32 = arith.constant 0 : i32
    %c0_i32_0 = arith.constant 0 : i32
    %c0_i32_1 = arith.constant 0 : i32
    return %c0_i32, %c0_i32_0 : i32, i32
  }
  func.func @transform_3(%arg0: i32, %arg1: i32) -> (i32, i32) {
    %c0_i32 = arith.constant 0 : i32
    %c0_i32_0 = arith.constant 0 : i32
    %c0_i32_1 = arith.constant 0 : i32
    return %c0_i32, %c0_i32_0 : i32, i32
  }
  func.func @transform_4(%arg0: i32, %arg1: i32) -> (i32, i32, i32) {
    %c0_i32 = arith.constant 0 : i32
    %c0_i32_0 = arith.constant 0 : i32
    return %arg0, %arg1, %c0_i32 : i32, i32, i32
  }
}

module attributes {stable_mosaic.version = 11 : i64} {
  func.func @_conv_silu_kernel(%arg0: i32, %arg1: i32, %arg2: memref<1x64x256xbf16, #tpu.memory_space<vmem>>, %arg3: memref<256x32xbf16, #tpu.memory_space<vmem>>, %arg4: memref<1x32xf32, #tpu.memory_space<vmem>>, %arg5: memref<1x32xf32, #tpu.memory_space<vmem>>, %arg6: memref<32x39xbf16, #tpu.memory_space<vmem>>, %arg7: memref<1x39xf32, #tpu.memory_space<vmem>>, %arg8: memref<1x64x32xbf16, #tpu.memory_space<vmem>>, %arg9: memref<1x64x39xbf16, #tpu.memory_space<vmem>>) attributes {dimension_semantics = [#tpu.dimension_semantics<parallel>, #tpu.dimension_semantics<parallel>], iteration_bounds = array<i64: 2, 1>, scalar_prefetch = 0 : i64, scratch_operands = 0 : i64, tpu.core_type = #tpu.core_type<tc>, window_params = [{transform_indices = @transform_0, window_bounds = array<i64: 1, 64, 256>}, {pipeline_mode = #tpu.pipeline_mode<synchronous>, transform_indices = @transform_1, window_bounds = array<i64: 256, 32>}, {pipeline_mode = #tpu.pipeline_mode<synchronous>, transform_indices = @transform_2, window_bounds = array<i64: 1, 32>}, {pipeline_mode = #tpu.pipeline_mode<synchronous>, transform_indices = @transform_3, window_bounds = array<i64: 1, 32>}, {pipeline_mode = #tpu.pipeline_mode<synchronous>, transform_indices = @transform_4, window_bounds = array<i64: 32, 39>}, {pipeline_mode = #tpu.pipeline_mode<synchronous>, transform_indices = @transform_5, window_bounds = array<i64: 1, 39>}, {transform_indices = @transform_6, window_bounds = array<i64: 1, 64, 32>}, {transform_indices = @transform_7, window_bounds = array<i64: 1, 64, 39>}]} {
    %c0 = arith.constant 0 : index
    %c0_0 = arith.constant 0 : index
    %c0_1 = arith.constant 0 : index
    %0 = vector.load %arg2[%c0, %c0_0, %c0_1] : memref<1x64x256xbf16, #tpu.memory_space<vmem>>, vector<1x64x256xbf16>
    %1 = vector.shape_cast %0 : vector<1x64x256xbf16> to vector<64x256xbf16>
    %c0_2 = arith.constant 0 : index
    %c0_3 = arith.constant 0 : index
    %2 = vector.load %arg3[%c0_2, %c0_3] : memref<256x32xbf16, #tpu.memory_space<vmem>>, vector<256x32xbf16>
    %cst = arith.constant dense<0.000000e+00> : vector<64x32xf32>
    %3 = tpu.matmul %1, %2, %cst {dimension_numbers = #tpu.dot_dimension_numbers<[1], [0], [0], [1], [0, 0, 1, 1], [], []>} : vector<64x256xbf16>, vector<256x32xbf16>, vector<64x32xf32> -> vector<64x32xf32>
    %c0_4 = arith.constant 0 : index
    %c0_5 = arith.constant 0 : index
    %4 = vector.load %arg4[%c0_4, %c0_5] : memref<1x32xf32, #tpu.memory_space<vmem>>, vector<1x32xf32>
    %5 = vector.broadcast %4 : vector<1x32xf32> to vector<64x32xf32>
    %6 = arith.mulf %3, %5 : vector<64x32xf32>
    %c0_6 = arith.constant 0 : index
    %c0_7 = arith.constant 0 : index
    %7 = vector.load %arg5[%c0_6, %c0_7] : memref<1x32xf32, #tpu.memory_space<vmem>>, vector<1x32xf32>
    %8 = vector.broadcast %7 : vector<1x32xf32> to vector<64x32xf32>
    %9 = arith.addf %6, %8 : vector<64x32xf32>
    %10 = arith.negf %9 : vector<64x32xf32>
    %11 = math.exp %10 : vector<64x32xf32>
    %cst_8 = arith.constant 1.000000e+00 : f32
    %12 = vector.broadcast %cst_8 : f32 to vector<64x32xf32>
    %13 = arith.addf %12, %11 : vector<64x32xf32>
    %14 = arith.divf %12, %13 : vector<64x32xf32>
    %15 = arith.mulf %9, %14 : vector<64x32xf32>
    %16 = arith.truncf %15 : vector<64x32xf32> to vector<64x32xbf16>
    %c0_9 = arith.constant 0 : index
    %c0_10 = arith.constant 0 : index
    %c0_11 = arith.constant 0 : index
    %17 = vector.load %arg8[%c0_9, %c0_10, %c0_11] : memref<1x64x32xbf16, #tpu.memory_space<vmem>>, vector<1x64x32xbf16>
    %18 = vector.shape_cast %17 : vector<1x64x32xbf16> to vector<64x32xbf16>
    %19 = vector.shape_cast %16 : vector<64x32xbf16> to vector<1x64x32xbf16>
    tpu.vector_store %arg8[%c0_9, %c0_10, %c0_11], %19 {strides = array<i32>} : memref<1x64x32xbf16, #tpu.memory_space<vmem>>, vector<1x64x32xbf16>,
    %c0_12 = arith.constant 0 : index
    %c0_13 = arith.constant 0 : index
    %20 = vector.load %arg6[%c0_12, %c0_13] : memref<32x39xbf16, #tpu.memory_space<vmem>>, vector<32x39xbf16>
    %cst_14 = arith.constant dense<0.000000e+00> : vector<64x39xf32>
    %21 = tpu.matmul %16, %20, %cst_14 {dimension_numbers = #tpu.dot_dimension_numbers<[1], [0], [0], [1], [0, 0, 1, 1], [], []>} : vector<64x32xbf16>, vector<32x39xbf16>, vector<64x39xf32> -> vector<64x39xf32>
    %c0_15 = arith.constant 0 : index
    %c0_16 = arith.constant 0 : index
    %22 = vector.load %arg7[%c0_15, %c0_16] : memref<1x39xf32, #tpu.memory_space<vmem>>, vector<1x39xf32>
    %23 = vector.broadcast %22 : vector<1x39xf32> to vector<64x39xf32>
    %24 = arith.addf %21, %23 : vector<64x39xf32>
    %25 = arith.truncf %24 : vector<64x39xf32> to vector<64x39xbf16>
    %c0_17 = arith.constant 0 : index
    %c0_18 = arith.constant 0 : index
    %c0_19 = arith.constant 0 : index
    %26 = vector.load %arg9[%c0_17, %c0_18, %c0_19] : memref<1x64x39xbf16, #tpu.memory_space<vmem>>, vector<1x64x39xbf16>
    %27 = vector.shape_cast %26 : vector<1x64x39xbf16> to vector<64x39xbf16>
    %28 = vector.shape_cast %25 : vector<64x39xbf16> to vector<1x64x39xbf16>
    tpu.vector_store %arg9[%c0_17, %c0_18, %c0_19], %28 {strides = array<i32>} : memref<1x64x39xbf16, #tpu.memory_space<vmem>>, vector<1x64x39xbf16>,
    return
  }
  func.func @transform_0(%arg0: i32, %arg1: i32) -> (i32, i32, i32) {
    %c0_i32 = arith.constant 0 : i32
    %c0_i32_0 = arith.constant 0 : i32
    return %arg0, %arg1, %c0_i32 : i32, i32, i32
  }
  func.func @transform_1(%arg0: i32, %arg1: i32) -> (i32, i32) {
    %c0_i32 = arith.constant 0 : i32
    %c0_i32_0 = arith.constant 0 : i32
    %c0_i32_1 = arith.constant 0 : i32
    return %c0_i32, %c0_i32_0 : i32, i32
  }
  func.func @transform_2(%arg0: i32, %arg1: i32) -> (i32, i32) {
    %c0_i32 = arith.constant 0 : i32
    %c0_i32_0 = arith.constant 0 : i32
    %c0_i32_1 = arith.constant 0 : i32
    return %c0_i32, %c0_i32_0 : i32, i32
  }
  func.func @transform_3(%arg0: i32, %arg1: i32) -> (i32, i32) {
    %c0_i32 = arith.constant 0 : i32
    %c0_i32_0 = arith.constant 0 : i32
    %c0_i32_1 = arith.constant 0 : i32
    return %c0_i32, %c0_i32_0 : i32, i32
  }
  func.func @transform_4(%arg0: i32, %arg1: i32) -> (i32, i32) {
    %c0_i32 = arith.constant 0 : i32
    %c0_i32_0 = arith.constant 0 : i32
    %c0_i32_1 = arith.constant 0 : i32
    return %c0_i32, %c0_i32_0 : i32, i32
  }
  func.func @transform_5(%arg0: i32, %arg1: i32) -> (i32, i32) {
    %c0_i32 = arith.constant 0 : i32
    %c0_i32_0 = arith.constant 0 : i32
    %c0_i32_1 = arith.constant 0 : i32
    return %c0_i32, %c0_i32_0 : i32, i32
  }
  func.func @transform_6(%arg0: i32, %arg1: i32) -> (i32, i32, i32) {
    %c0_i32 = arith.constant 0 : i32
    %c0_i32_0 = arith.constant 0 : i32
    return %arg0, %arg1, %c0_i32 : i32, i32, i32
  }
  func.func @transform_7(%arg0: i32, %arg1: i32) -> (i32, i32, i32) {
    %c0_i32 = arith.constant 0 : i32
    %c0_i32_0 = arith.constant 0 : i32
    return %arg0, %arg1, %c0_i32 : i32, i32, i32
  }
}

module attributes {stable_mosaic.version = 11 : i64} {
  func.func @_conv_silu_kernel(%arg0: i32, %arg1: i32, %arg2: memref<1x16x384xbf16, #tpu.memory_space<vmem>>, %arg3: memref<384x64xbf16, #tpu.memory_space<vmem>>, %arg4: memref<1x64xf32, #tpu.memory_space<vmem>>, %arg5: memref<1x64xf32, #tpu.memory_space<vmem>>, %arg6: memref<64x39xbf16, #tpu.memory_space<vmem>>, %arg7: memref<1x39xf32, #tpu.memory_space<vmem>>, %arg8: memref<1x16x39xbf16, #tpu.memory_space<vmem>>) attributes {dimension_semantics = [#tpu.dimension_semantics<parallel>, #tpu.dimension_semantics<parallel>], iteration_bounds = array<i64: 2, 1>, scalar_prefetch = 0 : i64, scratch_operands = 0 : i64, tpu.core_type = #tpu.core_type<tc>, window_params = [{transform_indices = @transform_0, window_bounds = array<i64: 1, 16, 384>}, {pipeline_mode = #tpu.pipeline_mode<synchronous>, transform_indices = @transform_1, window_bounds = array<i64: 384, 64>}, {pipeline_mode = #tpu.pipeline_mode<synchronous>, transform_indices = @transform_2, window_bounds = array<i64: 1, 64>}, {pipeline_mode = #tpu.pipeline_mode<synchronous>, transform_indices = @transform_3, window_bounds = array<i64: 1, 64>}, {pipeline_mode = #tpu.pipeline_mode<synchronous>, transform_indices = @transform_4, window_bounds = array<i64: 64, 39>}, {pipeline_mode = #tpu.pipeline_mode<synchronous>, transform_indices = @transform_5, window_bounds = array<i64: 1, 39>}, {transform_indices = @transform_6, window_bounds = array<i64: 1, 16, 39>}]} {
    %c0 = arith.constant 0 : index
    %c0_0 = arith.constant 0 : index
    %c0_1 = arith.constant 0 : index
    %0 = vector.load %arg2[%c0, %c0_0, %c0_1] : memref<1x16x384xbf16, #tpu.memory_space<vmem>>, vector<1x16x384xbf16>
    %1 = vector.shape_cast %0 : vector<1x16x384xbf16> to vector<16x384xbf16>
    %c0_2 = arith.constant 0 : index
    %c0_3 = arith.constant 0 : index
    %2 = vector.load %arg3[%c0_2, %c0_3] : memref<384x64xbf16, #tpu.memory_space<vmem>>, vector<384x64xbf16>
    %cst = arith.constant dense<0.000000e+00> : vector<16x64xf32>
    %3 = tpu.matmul %1, %2, %cst {dimension_numbers = #tpu.dot_dimension_numbers<[1], [0], [0], [1], [0, 0, 1, 1], [], []>} : vector<16x384xbf16>, vector<384x64xbf16>, vector<16x64xf32> -> vector<16x64xf32>
    %c0_4 = arith.constant 0 : index
    %c0_5 = arith.constant 0 : index
    %4 = vector.load %arg4[%c0_4, %c0_5] : memref<1x64xf32, #tpu.memory_space<vmem>>, vector<1x64xf32>
    %5 = vector.broadcast %4 : vector<1x64xf32> to vector<16x64xf32>
    %6 = arith.mulf %3, %5 : vector<16x64xf32>
    %c0_6 = arith.constant 0 : index
    %c0_7 = arith.constant 0 : index
    %7 = vector.load %arg5[%c0_6, %c0_7] : memref<1x64xf32, #tpu.memory_space<vmem>>, vector<1x64xf32>
    %8 = vector.broadcast %7 : vector<1x64xf32> to vector<16x64xf32>
    %9 = arith.addf %6, %8 : vector<16x64xf32>
    %10 = arith.negf %9 : vector<16x64xf32>
    %11 = math.exp %10 : vector<16x64xf32>
    %cst_8 = arith.constant 1.000000e+00 : f32
    %12 = vector.broadcast %cst_8 : f32 to vector<16x64xf32>
    %13 = arith.addf %12, %11 : vector<16x64xf32>
    %14 = arith.divf %12, %13 : vector<16x64xf32>
    %15 = arith.mulf %9, %14 : vector<16x64xf32>
    %16 = arith.truncf %15 : vector<16x64xf32> to vector<16x64xbf16>
    %c0_9 = arith.constant 0 : index
    %c0_10 = arith.constant 0 : index
    %17 = vector.load %arg6[%c0_9, %c0_10] : memref<64x39xbf16, #tpu.memory_space<vmem>>, vector<64x39xbf16>
    %cst_11 = arith.constant dense<0.000000e+00> : vector<16x39xf32>
    %18 = tpu.matmul %16, %17, %cst_11 {dimension_numbers = #tpu.dot_dimension_numbers<[1], [0], [0], [1], [0, 0, 1, 1], [], []>} : vector<16x64xbf16>, vector<64x39xbf16>, vector<16x39xf32> -> vector<16x39xf32>
    %c0_12 = arith.constant 0 : index
    %c0_13 = arith.constant 0 : index
    %19 = vector.load %arg7[%c0_12, %c0_13] : memref<1x39xf32, #tpu.memory_space<vmem>>, vector<1x39xf32>
    %20 = vector.broadcast %19 : vector<1x39xf32> to vector<16x39xf32>
    %21 = arith.addf %18, %20 : vector<16x39xf32>
    %22 = arith.truncf %21 : vector<16x39xf32> to vector<16x39xbf16>
    %c0_14 = arith.constant 0 : index
    %c0_15 = arith.constant 0 : index
    %c0_16 = arith.constant 0 : index
    %23 = vector.load %arg8[%c0_14, %c0_15, %c0_16] : memref<1x16x39xbf16, #tpu.memory_space<vmem>>, vector<1x16x39xbf16>
    %24 = vector.shape_cast %23 : vector<1x16x39xbf16> to vector<16x39xbf16>
    %25 = vector.shape_cast %22 : vector<16x39xbf16> to vector<1x16x39xbf16>
    tpu.vector_store %arg8[%c0_14, %c0_15, %c0_16], %25 {strides = array<i32>} : memref<1x16x39xbf16, #tpu.memory_space<vmem>>, vector<1x16x39xbf16>,
    return
  }
  func.func @transform_0(%arg0: i32, %arg1: i32) -> (i32, i32, i32) {
    %c0_i32 = arith.constant 0 : i32
    %c0_i32_0 = arith.constant 0 : i32
    return %arg0, %arg1, %c0_i32 : i32, i32, i32
  }
  func.func @transform_1(%arg0: i32, %arg1: i32) -> (i32, i32) {
    %c0_i32 = arith.constant 0 : i32
    %c0_i32_0 = arith.constant 0 : i32
    %c0_i32_1 = arith.constant 0 : i32
    return %c0_i32, %c0_i32_0 : i32, i32
  }
  func.func @transform_2(%arg0: i32, %arg1: i32) -> (i32, i32) {
    %c0_i32 = arith.constant 0 : i32
    %c0_i32_0 = arith.constant 0 : i32
    %c0_i32_1 = arith.constant 0 : i32
    return %c0_i32, %c0_i32_0 : i32, i32
  }
  func.func @transform_3(%arg0: i32, %arg1: i32) -> (i32, i32) {
    %c0_i32 = arith.constant 0 : i32
    %c0_i32_0 = arith.constant 0 : i32
    %c0_i32_1 = arith.constant 0 : i32
    return %c0_i32, %c0_i32_0 : i32, i32
  }
  func.func @transform_4(%arg0: i32, %arg1: i32) -> (i32, i32) {
    %c0_i32 = arith.constant 0 : i32
    %c0_i32_0 = arith.constant 0 : i32
    %c0_i32_1 = arith.constant 0 : i32
    return %c0_i32, %c0_i32_0 : i32, i32
  }
  func.func @transform_5(%arg0: i32, %arg1: i32) -> (i32, i32) {
    %c0_i32 = arith.constant 0 : i32
    %c0_i32_0 = arith.constant 0 : i32
    %c0_i32_1 = arith.constant 0 : i32
    return %c0_i32, %c0_i32_0 : i32, i32
  }
  func.func @transform_6(%arg0: i32, %arg1: i32) -> (i32, i32, i32) {
    %c0_i32 = arith.constant 0 : i32
    %c0_i32_0 = arith.constant 0 : i32
    return %arg0, %arg1, %c0_i32 : i32, i32, i32
  }
}

</mosaic_0001>

<bundles_post_ra>
// kernel: model_forward.3
= control target key start
LH: loop header
LB: loop body
LE: loop exit
PB: predicated region body
PF: predicated region fallthrough
CT: control target
= control target key end

     0   :  { %s1589_s15 = smov 0   ;;  %s1591_s16 = smov 0   ;;  %s1966_s0 = inlined_call_operand.vmem [shape: bf16[2,256,128], index: 0, kind: input, shape index: {}]   ;;  %s1967_s1 = inlined_call_operand.vmem [shape: bf16[128,16], index: 1, kind: input, shape index: {}]   ;;  %s1968_s2 = inlined_call_operand.vmem [shape: f32[1,16], index: 2, kind: input, shape index: {}]   ;;  %s1969_s3 = inlined_call_operand.vmem [shape: f32[1,16], index: 3, kind: input, shape index: {}]   ;;  %s1970_s4 = inlined_call_operand.vmem [shape: bf16[2,256,16], index: 4, kind: output, shape index: {}]  }
   0x1   :  { %s1593_s17 = smov 0  }
   0x2 LB: > { %s26_s18 = sadd.s32 1, %s1558_s16  ;;  %p1145_p0 = scmp.ge.s32.totalorder %s1562_s17, 1  ;;  %s1562_s17 = sphi %s1593_s17, %s14_s17   ;;  %s1558_s16 = sphi %s1591_s16, %s1972_s16   ;;  %s1554_s15 = sphi %s1589_s15, %s1971_s15  }
   0x3   : > { %p28_p1 = scmp.ge.s32.totalorder %s26_s18, 2  ;;  %p183_p2 = scmp.lt.s32.totalorder %s1562_s17, 3 }
   0x5   : > { %s1974_s18 = smov (%p28_p1, %s26_s18), 0  ;;  %p184_p3 = pnand %p1145_p0, %p183_p2 }
   0x6   : > { %v1388_v0 = vld [vmem:[%s1967_s1] sm:$0xff] (!%p184_p3)   ;;  %p218_p4 = scmp.lt.s32.totalorder (!%p184_p3), %s1554_s15, 1  ;;  %v1389_v1 = vld [vmem:[%s1967_s1 + $0x8] sm:$0xff] (!%p184_p3)   ;;  %v1390_v2 = vld [vmem:[%s1967_s1 + $0x10] sm:$0xff] (!%p184_p3)   ;;  %vm1021_vm0 = vcmask (!%p184_p3), 125952  }
   0x7   : > { %187 = sbr.rel (%p184_p3) target bundleno = 345 (0x159), region = 36  ;;  %1300 = vmatprep.subr.bf16.mxu0 (!%p184_p3), %v1388_v0  ;;  %1348 = vmatprep.subr.bf16.mxu1 (!%p184_p3), %v1388_v0  ;;  %v1391_v3 = vld [vmem:[%s1967_s1 + $0x18] sm:$0xff] (!%p184_p3)   ;;  %v1392_v6 = vld [vmem:[%s1967_s1 + $0x20] sm:$0xff] (!%p184_p3)   ;;  %v1393_v7 = vld [vmem:[%s1967_s1 + $0x28] sm:$0xff] (!%p184_p3)  }
   0x8   : > { %1301 = vmatpush3.bf16.msra.mxu0 (!%p184_p3), %v1388_v0  ;;  %1356 = vmatpush3.bf16.msra.mxu1 (!%p184_p3), %v1388_v0  ;;  %v1394_v8 = vld [vmem:[%s1967_s1 + $0x30] sm:$0xff] (!%p184_p3)   ;;  %v1395_v9 = vld [vmem:[%s1967_s1 + $0x38] sm:$0xff] (!%p184_p3)   ;;  %v1660_v24 = vld [vmem:[%s1968_s2] ss:$0 sm:$0xff] (!%p184_p3) }
   0x9   : > { %1302 = vmatprep.subr.bf16.mxu0 (!%p184_p3), %v1389_v1  ;;  %1349 = vmatprep.subr.bf16.mxu1 (!%p184_p3), %v1389_v1  ;;  %v1665_v26 = vld [vmem:[%s1969_s3] ss:$0 sm:$0xff] (!%p184_p3) }
   0xc   : > { %1303 = vmatpush3.bf16.msra.mxu0 (!%p184_p3), %v1389_v1  ;;  %1357 = vmatpush3.bf16.msra.mxu1 (!%p184_p3), %v1389_v1 }
   0xd   : > { %1304 = vmatprep.subr.bf16.mxu0 (!%p184_p3), %v1390_v2  ;;  %1350 = vmatprep.subr.bf16.mxu1 (!%p184_p3), %v1390_v2 }
   0xe   : > { %s1976_s15 = smov (!%p218_p4, %s1554_s15), 1 }
   0xf   : > { %s1242_s25 = sshll.u32 %s1976_s15, 7 }
  0x10   : > { %s1624_s28 = scalar_lea.vmem %s1966_s0, %s1242_s25  ;;  %1305 = vmatpush3.bf16.msra.mxu0 %v1390_v2  ;;  %1358 = vmatpush3.bf16.msra.mxu1 %v1390_v2  ;;  %s1805_s23 = scalar_lea.vmem %s1970_s4, %s1242_s25 }
  0x11   : > { %v1396_v4 = vld [vmem:[%s1624_s28] sm:$0xff]   ;;  %1306 = vmatprep.subr.bf16.mxu0 %v1391_v3  ;;  %1351 = vmatprep.subr.bf16.mxu1 %v1391_v3  ;;  %v1398_v10 = vld [vmem:[%s1624_s28 + $0x8] sm:$0xff]   ;;  %v1400_v12 = vld [vmem:[%s1624_s28 + $0x10] sm:$0xff]  }
  0x12   : > { %v1397_v5 = vld [vmem:[%s1624_s28 + $0x40] sm:$0xff]   ;;  %1316 = vmatprep.mubr.bf16.mxu0 %v1396_v4  ;;  %v1399_v11 = vld [vmem:[%s1624_s28 + $0x48] sm:$0xff]   ;;  %v1401_v13 = vld [vmem:[%s1624_s28 + $0x50] sm:$0xff]  }
  0x13   : > { %1332 = vmatprep.mubr.bf16.mxu1 %v1397_v5  ;;  %v1402_v14 = vld [vmem:[%s1624_s28 + $0x18] sm:$0xff]   ;;  %v1404_v16 = vld [vmem:[%s1624_s28 + $0x20] sm:$0xff]   ;;  %v1406_v18 = vld [vmem:[%s1624_s28 + $0x28] sm:$0xff]  }
  0x14   : > { %1307 = vmatpush3.bf16.msra.mxu0 %v1391_v3  ;;  %1359 = vmatpush3.bf16.msra.mxu1 %v1391_v3  ;;  %v1403_v15 = vld [vmem:[%s1624_s28 + $0x58] sm:$0xff]   ;;  %v1405_v17 = vld [vmem:[%s1624_s28 + $0x60] sm:$0xff]   ;;  %v1407_v19 = vld [vmem:[%s1624_s28 + $0x68] sm:$0xff]  }
  0x15   : > { %1308 = vmatprep.subr.bf16.mxu0 %v1392_v6  ;;  %1352 = vmatprep.subr.bf16.mxu1 %v1392_v6  ;;  %v1408_v20 = vld [vmem:[%s1624_s28 + $0x30] sm:$0xff]   ;;  %v1410_v22 = vld [vmem:[%s1624_s28 + $0x38] sm:$0xff]  }
  0x16   : > { %v1409_v21 = vld [vmem:[%s1624_s28 + $0x70] sm:$0xff]   ;;  %v1411_v23 = vld [vmem:[%s1624_s28 + $0x78] sm:$0xff]  }
  0x18   : > { %1309 = vmatpush3.bf16.msra.mxu0 %v1392_v6  ;;  %1360 = vmatpush3.bf16.msra.mxu1 %v1392_v6 }
  0x19   : > { %1310 = vmatprep.subr.bf16.mxu0 %v1393_v7  ;;  %1353 = vmatprep.subr.bf16.mxu1 %v1393_v7 }
  0x1c   : > { %1311 = vmatpush3.bf16.msra.mxu0 %v1393_v7  ;;  %1361 = vmatpush3.bf16.msra.mxu1 %v1393_v7 }
  0x1d   : > { %1312 = vmatprep.subr.bf16.mxu0 %v1394_v8  ;;  %1354 = vmatprep.subr.bf16.mxu1 %v1394_v8 }
  0x20   : > { %1313 = vmatpush3.bf16.msra.mxu0 %v1394_v8  ;;  %1362 = vmatpush3.bf16.msra.mxu1 %v1394_v8 }
  0x21   : > { %1314 = vmatprep.subr.bf16.mxu0 %v1395_v9  ;;  %1355 = vmatprep.subr.bf16.mxu1 %v1395_v9 }
  0x24   : > { %1315 = vmatpush3.bf16.msra.mxu0 %v1395_v9  ;;  %1363 = vmatpush3.bf16.msra.mxu1 %v1395_v9 }
  0x27   : > { %1317 = vmatmul.mubr.bf16.vlgmr.msra.gmra.mrb[0].mxu0 %v1398_v10  ;;  %1333 = vmatmul.mubr.bf16.vlgmr.msra.gmra.mrb[0].mxu1 %v1399_v11 }
  0x28   : > { %1320 = vmatprep.mubr.bf16.mxu0 %v1400_v12  ;;  %1336 = vmatprep.mubr.bf16.mxu1 %v1401_v13 }
  0x2f   : > { %1321 = vmatmul.mubr.bf16.gmra.mrb[4].mxu0 %v1402_v14  ;;  %1337 = vmatmul.mubr.bf16.gmra.mrb[4].mxu1 %v1403_v15 }
  0x30   : > { %1324 = vmatprep.mubr.bf16.mxu0 %v1404_v16  ;;  %1340 = vmatprep.mubr.bf16.mxu1 %v1405_v17 }
  0x37   : > { %1325 = vmatmul.mubr.bf16.gmra.mrb[8].mxu0 %v1406_v18  ;;  %1341 = vmatmul.mubr.bf16.gmra.mrb[8].mxu1 %v1407_v19 }
  0x38   : > { %1328 = vmatprep.mubr.bf16.mxu0 %v1408_v20  ;;  %1344 = vmatprep.mubr.bf16.mxu1 %v1409_v21 }
  0x3f   : > { %1329 = vmatmul.mubr.bf16.gmra.mrb[12].mxu0 %v1410_v22  ;;  %1345 = vmatmul.mubr.bf16.gmra.mrb[12].mxu1 %v1411_v23 }
  0xfa   : > { %v1318_v25 = vpop.f32.mrb[0].mxu0  ;;  %v1334_v27 = vpop.f32.mrb[0].mxu1 }
  0xfb   : > { %v600_v28 = vmul.f32 %v1318_v25, %v1660_v24  ;;  %v616_v29 = vmul.f32 %v1334_v27, %v1660_v24  ;;  %v464_v30 = vpop.f32.mrb[1].mxu0  ;;  %v528_v31 = vpop.f32.mrb[1].mxu1 }
  0xfc   : > { %v598_v32 = vmul.f32 %v1660_v24, %v464_v30  ;;  %v614_v33 = vmul.f32 %v1660_v24, %v528_v31  ;;  %v1319_v34 = vpop.f32.mrb[2].mxu0  ;;  %v1335_v35 = vpop.f32.mrb[2].mxu1 }
  0xfd   : > { %v1672_v36 = vadd.f32 %v1665_v26, %v600_v28  ;;  %v1675_v37 = vadd.f32 %v1665_v26, %v616_v29  ;;  %v601_v38 = vmul.f32 %v1319_v34, %v1660_v24  ;;  %v617_v39 = vmul.f32 %v1335_v35, %v1660_v24  ;;  %v467_v40 = vpop.f32.mrb[3].mxu0  ;;  %v531_v41 = vpop.f32.mrb[3].mxu1 }
  0xfe   : > { %v1680_v42 = vadd.f32 %v1665_v26, %v598_v32  ;;  %v1683_v43 = vadd.f32 %v1665_v26, %v614_v33  ;;  %v599_v44 = vmul.f32 %v1660_v24, %v467_v40  ;;  %v615_v45 = vmul.f32 %v1660_v24, %v531_v41 }
  0xff   : > { %v1178_v46 = vmul.f32 -1.442695, %v1672_v36  ;;  %v1194_v47 = vmul.f32 -1.442695, %v1675_v37  ;;  %v1690_v48 = vadd.f32 %v1665_v26, %v601_v38  ;;  %v1693_v49 = vadd.f32 %v1665_v26, %v617_v39 }
 0x100   : > { %v1176_v50 = vmul.f32 -1.442695, %v1680_v42  ;;  %v1192_v51 = vmul.f32 -1.442695, %v1683_v43  ;;  %v1698_v52 = vadd.f32 %v1665_v26, %v599_v44  ;;  %v1701_v53 = vadd.f32 %v1665_v26, %v615_v45 }
 0x101   : > { %1412 = vpow2.f32 %v1178_v46  ;;  %v1179_v54 = vmul.f32 -1.442695, %v1690_v48  ;;  %v1195_v55 = vmul.f32 -1.442695, %v1693_v49 }
 0x102   : > { %1414 = vpow2.f32 %v1194_v47  ;;  %v1322_v56 = vpop.f32.mrb[4].mxu0  ;;  %v1338_v57 = vpop.f32.mrb[4].mxu1  ;;  %v1177_v58 = vmul.f32 -1.442695, %v1698_v52  ;;  %v1193_v63 = vmul.f32 -1.442695, %v1701_v53 }
 0x103   : > { %1416 = vpow2.f32 %v1176_v50  ;;  %v604_v59 = vmul.f32 %v1322_v56, %v1660_v24  ;;  %v620_v60 = vmul.f32 %v1338_v57, %v1660_v24  ;;  %v480_v61 = vpop.f32.mrb[5].mxu0  ;;  %v544_v62 = vpop.f32.mrb[5].mxu1 }
 0x104   : > { %1418 = vpow2.f32 %v1192_v51  ;;  %v602_v0 = vmul.f32 %v1660_v24, %v480_v61  ;;  %v618_v1 = vmul.f32 %v1660_v24, %v544_v62  ;;  %v1323_v2 = vpop.f32.mrb[6].mxu0  ;;  %v1339_v3 = vpop.f32.mrb[6].mxu1 }
 0x105   : > { %1420 = vpow2.f32 %v1179_v54  ;;  %v1712_v4 = vadd.f32 %v1665_v26, %v604_v59  ;;  %v1715_v5 = vadd.f32 %v1665_v26, %v620_v60  ;;  %v605_v6 = vmul.f32 %v1323_v2, %v1660_v24  ;;  %v483_v7 = vpop.f32.mrb[7].mxu0  ;;  %v547_v8 = vpop.f32.mrb[7].mxu1 }
 0x106   : > { %1422 = vpow2.f32 %v1195_v55  ;;  %v1719_v9 = vadd.f32 %v1665_v26, %v602_v0  ;;  %v1722_v10 = vadd.f32 %v1665_v26, %v618_v1  ;;  %v621_v16 = vmul.f32 %v1339_v3, %v1660_v24 }
 0x107   : > { %1424 = vpow2.f32 %v1177_v58  ;;  %v1182_v11 = vmul.f32 -1.442695, %v1712_v4  ;;  %v1198_v12 = vmul.f32 -1.442695, %v1715_v5  ;;  %v1727_v13 = vadd.f32 %v1665_v26, %v605_v6 }
 0x108   : > { %1426 = vpow2.f32 %v1193_v63  ;;  %v1180_v14 = vmul.f32 -1.442695, %v1719_v9  ;;  %v1196_v15 = vmul.f32 -1.442695, %v1722_v10  ;;  %v603_v18 = vmul.f32 %v1660_v24, %v483_v7 }
 0x109   : > { %1428 = vpow2.f32 %v1182_v11  ;;  %v1183_v17 = vmul.f32 -1.442695, %v1727_v13  ;;  %v1735_v28 = vadd.f32 %v1665_v26, %v621_v16  ;;  %v619_v34 = vmul.f32 %v1660_v24, %v547_v8 }
 0x10a   : > { %1430 = vpow2.f32 %v1198_v12  ;;  %v1326_v19 = vpop.f32.mrb[8].mxu0  ;;  %v1342_v20 = vpop.f32.mrb[8].mxu1  ;;  %v1738_v33 = vadd.f32 %v1665_v26, %v603_v18 }
 0x10b   : > { %v1413_v21 = vpop.eup %1412  ;;  %1432 = vpow2.f32 %v1180_v14  ;;  %v496_v22 = vpop.f32.mrb[9].mxu0  ;;  %v608_v40 = vmul.f32 %v1326_v19, %v1660_v24  ;;  %v624_v46 = vmul.f32 %v1342_v20, %v1660_v24  ;;  %v1747_v54 = vmul.f32 -1.442695, %v1735_v28 }
 0x10c   : > { %v560_v23 = vpop.f32.mrb[9].mxu1  ;;  %v1415_v25 = vpop.eup %1414  ;;  %v767_v27 = vadd.f32 1.0, %v1413_v21  ;;  %1434 = vpow2.f32 %v1196_v15  ;;  %v606_v47 = vmul.f32 %v1660_v24, %v496_v22  ;;  %v1751_v58 = vmul.f32 -1.442695, %v1738_v33 }
 0x10d   : > { %v1327_v29 = vpop.f32.mrb[10].mxu0  ;;  %v1343_v30 = vpop.f32.mrb[10].mxu1  ;;  %v783_v32 = vadd.f32 1.0, %v1415_v25  ;;  %1436 = vpow2.f32 %v1183_v17  ;;  %v622_v55 = vmul.f32 %v1660_v24, %v560_v23  ;;  %v1754_v59 = vadd.f32 %v1665_v26, %v619_v34 }
 0x10e   : > { %v1417_v31 = vpop.eup %1416  ;;  %v499_v35 = vpop.f32.mrb[11].mxu0  ;;  %1438 = vrcp.f32 %v767_v27  ;;  %v1757_v62 = vadd.f32 %v1665_v26, %v608_v40  ;;  %v609_v63 = vmul.f32 %v1327_v29, %v1660_v24  ;;  %v1761_v6 = vadd.f32 %v1665_v26, %v624_v46 }
 0x10f   : > { %v1419_v38 = vpop.eup %1418  ;;  %v765_v39 = vadd.f32 1.0, %v1417_v31  ;;  %v1742_v41 = vpop.f32.mrb[11].mxu1  ;;  %1440 = vrcp.f32 %v783_v32  ;;  %v1764_v7 = vadd.f32 %v1665_v26, %v606_v47  ;;  %v1771_v15 = vadd.f32 %v1665_v26, %v622_v55 }
 0x110   : > { %v1421_v44 = vpop.eup %1420  ;;  %v781_v45 = vadd.f32 1.0, %v1419_v38  ;;  %v625_v16 = vmul.f32 %v1343_v30, %v1660_v24  ;;  %v1197_v21 = vmul.f32 -1.442695, %v1754_v59  ;;  %v607_v22 = vmul.f32 %v1660_v24, %v499_v35 }
 0x111   : > { %v1423_v50 = vpop.eup %1422  ;;  %1442 = vrcp.f32 %v765_v39  ;;  %v768_v51 = vadd.f32 1.0, %v1421_v44  ;;  %v1186_v30 = vmul.f32 -1.442695, %v1757_v62  ;;  %v1786_v31 = vadd.f32 %v1665_v26, %v609_v63 }
 0x112   : > { %v1425_v56 = vpop.eup %1424  ;;  %1444 = vrcp.f32 %v781_v45  ;;  %v784_v57 = vadd.f32 1.0, %v1423_v50  ;;  %v1330_v0 = vpop.f32.mrb[12].mxu0  ;;  %v1202_v38 = vmul.f32 -1.442695, %v1761_v6  ;;  %v1184_v35 = vmul.f32 -1.442695, %v1764_v7 }
 0x113   : > { %v1427_v60 = vpop.eup %1426  ;;  %1446 = vrcp.f32 %v768_v51  ;;  %v766_v61 = vadd.f32 1.0, %v1425_v56  ;;  %v1346_v1 = vpop.f32.mrb[12].mxu1  ;;  %v1200_v44 = vmul.f32 -1.442695, %v1771_v15  ;;  %v1792_v45 = vadd.f32 %v1665_v26, %v625_v16 }
 0x114   : > { %v1429_v2 = vpop.eup %1428  ;;  %1448 = vrcp.f32 %v784_v57  ;;  %v782_v3 = vadd.f32 1.0, %v1427_v60  ;;  %v1766_v8 = vpop.f32.mrb[13].mxu0  ;;  %v1796_v50 = vadd.f32 %v1665_v26, %v607_v22  ;;  %v623_v51 = vmul.f32 %v1660_v24, %v1742_v41 }
 0x115   : > { %v1768_v11 = vpop.f32.mrb[13].mxu1  ;;  %v1431_v12 = vpop.eup %1430  ;;  %1450 = vrcp.f32 %v766_v61  ;;  %v771_v14 = vadd.f32 1.0, %v1429_v2  ;;  %v612_v57 = vmul.f32 %v1330_v0, %v1660_v24  ;;  %v628_v63 = vmul.f32 %v1346_v1, %v1660_v24 }
 0x116   : > { %v1774_v17 = vpop.f32.mrb[14].mxu0  ;;  %v1776_v18 = vpop.f32.mrb[14].mxu1  ;;  %1452 = vrcp.f32 %v782_v3  ;;  %v787_v20 = vadd.f32 1.0, %v1431_v12 }
 0x117   : > { %v1433_v19 = vpop.eup %1432  ;;  %v1780_v23 = vpop.f32.mrb[15].mxu0  ;;  %1454 = vrcp.f32 %v771_v14 }
 0x118   : > { %v1782_v25 = vpop.f32.mrb[15].mxu1  ;;  %v1435_v27 = vpop.eup %1434  ;;  %v769_v29 = vadd.f32 1.0, %v1433_v19  ;;  %1456 = vrcp.f32 %v787_v20 }
 0x119   : > { %v1437_v32 = vpop.eup %1436  ;;  %v785_v34 = vadd.f32 1.0, %v1435_v27 }
 0x11a   : > { %v1439_v39 = vpop.eup %1438  ;;  %1458 = vrcp.f32 %v769_v29  ;;  %v772_v40 = vadd.f32 1.0, %v1437_v32  ;;  %v1185_v29 = vmul.f32 -1.442695, %v1796_v50 }
 0x11b   : > { %v1441_v46 = vpop.eup %1440  ;;  %v863_v47 = vmul.f32 %v1439_v39, %v1672_v36  ;;  %1460 = vrcp.f32 %v785_v34  ;;  %v1187_v36 = vmul.f32 -1.442695, %v1786_v31 }
 0x11c   : > { %v1443_v55 = vpop.eup %1442  ;;  %v879_v56 = vmul.f32 %v1441_v46, %v1675_v37  ;;  %1462 = vrcp.f32 %v772_v40  ;;  %v1203_v37 = vmul.f32 -1.442695, %v1792_v45 }
 0x11d   : > { %v1445_v60 = vpop.eup %1444  ;;  %v1246_v61 = vpack.c.bf16 %v863_v47, %v863_v47  ;;  %v861_v41 = vmul.f32 %v1443_v55, %v1680_v42  ;;  %1464 = vpow2.f32 %v1747_v54  ;;  %v1820_v42 = vadd.f32 %v1665_v26, %v623_v51 }
 0x11e   : > { %v1447_v2 = vpop.eup %1446  ;;  %v1262_v3 = vpack.c.bf16 %v879_v56, %v879_v56  ;;  %v877_v12 = vmul.f32 %v1445_v60, %v1683_v43  ;;  %1466 = vpow2.f32 %v1751_v58  ;;  %v1826_v58 = vadd.f32 %v1665_v26, %v612_v57 }
 0x11f   : > { %v1449_v14 = vpop.eup %1448  ;;  %1024 = vst.msk [vmem:[%s1805_s23 + $0x8] sm:$0xf] %vm1021_vm0, %v1246_v61  ;;  %v1244_v0 = vpack.c.bf16 %v861_v41, %v861_v41  ;;  %v864_v16 = vmul.f32 %v1447_v2, %v1690_v48  ;;  %1468 = vpow2.f32 %v1197_v21  ;;  %v1832_v21 = vadd.f32 %v1665_v26, %v628_v63 }
 0x120   : > { %v1451_v54 = vpop.eup %1450  ;;  %1040 = vst.msk [vmem:[%s1805_s23 + $0x48] sm:$0xf] %vm1021_vm0, %v1262_v3  ;;  %v1260_v43 = vpack.c.bf16 %v877_v12, %v877_v12  ;;  %v880_v1 = vmul.f32 %v1449_v14, %v1693_v49  ;;  %1470 = vpow2.f32 %v1186_v30  ;;  %v1201_v34 = vmul.f32 -1.442695, %v1820_v42 }
 0x121   : > { %v1453_v19 = vpop.eup %1452  ;;  %1022 = vst.msk [vmem:[%s1805_s23] sm:$0xf] %vm1021_vm0, %v1244_v0  ;;  %v1247_v48 = vpack.c.bf16 %v864_v16, %v864_v16  ;;  %v862_v20 = vmul.f32 %v1451_v54, %v1698_v52  ;;  %1472 = vpow2.f32 %v1202_v38  ;;  %v610_v12 = vmul.f32 %v1660_v24, %v1766_v8 }
 0x122   : > { %v1455_v22 = vpop.eup %1454  ;;  %1038 = vst.msk [vmem:[%s1805_s23 + $0x40] sm:$0xf] %vm1021_vm0, %v1260_v43  ;;  %v1263_v49 = vpack.c.bf16 %v880_v1, %v880_v1  ;;  %v878_v27 = vmul.f32 %v1453_v19, %v1701_v53  ;;  %1474 = vpow2.f32 %v1184_v35  ;;  %v1190_v35 = vmul.f32 -1.442695, %v1826_v58 }
 0x123   : > { %v1457_v30 = vpop.eup %1456  ;;  %1025 = vst.msk [vmem:[%s1805_s23 + $0xc] sm:$0xf] %vm1021_vm0, %v1247_v48  ;;  %v1245_v32 = vpack.c.bf16 %v862_v20, %v862_v20  ;;  %v867_v52 = vmul.f32 %v1455_v22, %v1712_v4  ;;  %1476 = vpow2.f32 %v1200_v44  ;;  %v1206_v44 = vmul.f32 -1.442695, %v1832_v21 }
 0x124   : > { %v1459_v38 = vpop.eup %1458  ;;  %1041 = vst.msk [vmem:[%s1805_s23 + $0x4c] sm:$0xf] %vm1021_vm0, %v1263_v49  ;;  %v1261_v39 = vpack.c.bf16 %v878_v27, %v878_v27  ;;  %v883_v53 = vmul.f32 %v1457_v30, %v1715_v5  ;;  %1478 = vpow2.f32 %v1187_v36  ;;  %v626_v0 = vmul.f32 %v1660_v24, %v1768_v11 }
 0x125   : > { %v1461_v40 = vpop.eup %1460  ;;  %1023 = vst.msk [vmem:[%s1805_s23 + $0x4] sm:$0xf] %vm1021_vm0, %v1245_v32  ;;  %v1250_v46 = vpack.c.bf16 %v867_v52, %v867_v52  ;;  %v865_v4 = vmul.f32 %v1459_v38, %v1719_v9  ;;  %1480 = vpow2.f32 %v1203_v37  ;;  %v613_v43 = vmul.f32 %v1774_v17, %v1660_v24 }
 0x126   : > { %v1463_v47 = vpop.eup %1462  ;;  %1039 = vst.msk [vmem:[%s1805_s23 + $0x44] sm:$0xf] %vm1021_vm0, %v1261_v39  ;;  %v1266_v51 = vpack.c.bf16 %v883_v53, %v883_v53  ;;  %v881_v5 = vmul.f32 %v1461_v40, %v1722_v10  ;;  %1482 = vpow2.f32 %v1185_v29  ;;  %v629_v48 = vmul.f32 %v1776_v18, %v1660_v24 }
 0x127   : > { %v1465_v55 = vpop.eup %1464  ;;  %1028 = vst.msk [vmem:[%s1805_s23 + $0x18] sm:$0xf] %vm1021_vm0, %v1250_v46  ;;  %v1248_v56 = vpack.c.bf16 %v865_v4, %v865_v4  ;;  %v868_v36 = vmul.f32 %v1463_v47, %v1727_v13  ;;  %1484 = vpow2.f32 %v1201_v34  ;;  %v1873_v22 = vadd.f32 %v1665_v26, %v610_v12 }
 0x128   : > { %v1467_v9 = vpop.eup %1466  ;;  %1044 = vst.msk [vmem:[%s1805_s23 + $0x58] sm:$0xf] %vm1021_vm0, %v1266_v51  ;;  %v1264_v57 = vpack.c.bf16 %v881_v5, %v881_v5  ;;  %v788_v60 = vadd.f32 1.0, %v1465_v55  ;;  %1486 = vpow2.f32 %v1190_v35  ;;  %v611_v11 = vmul.f32 %v1660_v24, %v1780_v23 }
 0x129   : > { %v1469_v61 = vpop.eup %1468  ;;  %1026 = vst.msk [vmem:[%s1805_s23 + $0x10] sm:$0xf] %vm1021_vm0, %v1248_v56  ;;  %v1251_v10 = vpack.c.bf16 %v868_v36, %v868_v36  ;;  %v770_v41 = vadd.f32 1.0, %v1467_v9  ;;  %1488 = vpow2.f32 %v1206_v44  ;;  %v1878_v17 = vadd.f32 %v1665_v26, %v626_v0 }
 0x12a   : > { %v1471_v63 = vpop.eup %1470  ;;  %1042 = vst.msk [vmem:[%s1805_s23 + $0x50] sm:$0xf] %vm1021_vm0, %v1264_v57  ;;  %1490 = vrcp.f32 %v788_v60  ;;  %v786_v2 = vadd.f32 1.0, %v1469_v61  ;;  %v627_v29 = vmul.f32 %v1660_v24, %v1782_v25  ;;  %v1883_v32 = vadd.f32 %v1665_v26, %v613_v43 }
 0x12b   : > { %v1473_v13 = vpop.eup %1472  ;;  %1029 = vst.msk [vmem:[%s1805_s23 + $0x1c] sm:$0xf] %vm1021_vm0, %v1251_v10  ;;  %1492 = vrcp.f32 %v770_v41  ;;  %v775_v3 = vadd.f32 1.0, %v1471_v63  ;;  %v1886_v23 = vadd.f32 %v1665_v26, %v629_v48  ;;  %v1188_v53 = vmul.f32 -1.442695, %v1873_v22 }
 0x12c   : > { %v1475_v37 = vpop.eup %1474  ;;  %1494 = vrcp.f32 %v786_v2  ;;  %v791_v14 = vadd.f32 1.0, %v1473_v13  ;;  %v1890_v35 = vadd.f32 %v1665_v26, %v611_v11  ;;  %v1204_v40 = vmul.f32 -1.442695, %v1878_v17 }
 0x12d   : > { %v1477_v16 = vpop.eup %1476  ;;  %1496 = vrcp.f32 %v775_v3  ;;  %v773_v54 = vadd.f32 1.0, %v1475_v37  ;;  %v1894_v46 = vadd.f32 %v1665_v26, %v627_v29  ;;  %v1191_v47 = vmul.f32 -1.442695, %v1883_v32 }
 0x12e   : > { %v1479_v1 = vpop.eup %1478  ;;  %1498 = vrcp.f32 %v791_v14  ;;  %v789_v19 = vadd.f32 1.0, %v1477_v16  ;;  %v1207_v55 = vmul.f32 -1.442695, %v1886_v23  ;;  %v1189_v26 = vmul.f32 -1.442695, %v1890_v35 }
 0x12f   : > { %v1481_v20 = vpop.eup %1480  ;;  %1500 = vrcp.f32 %v773_v54  ;;  %v776_v8 = vadd.f32 1.0, %v1479_v1  ;;  %v1205_v61 = vmul.f32 -1.442695, %v1894_v46 }
 0x130   : > { %v1483_v49 = vpop.eup %1482  ;;  %1502 = vrcp.f32 %v789_v19  ;;  %v792_v27 = vadd.f32 1.0, %v1481_v20 }
 0x131   : > { %v1485_v30 = vpop.eup %1484  ;;  %1504 = vrcp.f32 %v776_v8  ;;  %v774_v18 = vadd.f32 1.0, %v1483_v49 }
 0x132   : > { %v1487_v52 = vpop.eup %1486  ;;  %1506 = vrcp.f32 %v792_v27  ;;  %v790_v34 = vadd.f32 1.0, %v1485_v30 }
 0x133   : > { %v1489_v38 = vpop.eup %1488  ;;  %1508 = vrcp.f32 %v774_v18  ;;  %v779_v39 = vadd.f32 1.0, %v1487_v52 }
 0x134   : > { %v1491_v24 = vpop.eup %1490  ;;  %1510 = vrcp.f32 %v790_v34  ;;  %v795_v25 = vadd.f32 1.0, %v1489_v38 }
 0x135   : > { %v1493_v4 = vpop.eup %1492  ;;  %v884_v44 = vmul.f32 %v1491_v24, %v1735_v28  ;;  %1512 = vrcp.f32 %v779_v39 }
 0x136   : > { %v1495_v51 = vpop.eup %1494  ;;  %v866_v5 = vmul.f32 %v1493_v4, %v1738_v33  ;;  %1514 = vrcp.f32 %v795_v25 }
 0x137   : > { %v1497_v56 = vpop.eup %1496  ;;  %v1267_v36 = vpack.c.bf16 %v884_v44, %v884_v44  ;;  %v882_v9 = vmul.f32 %v1495_v51, %v1754_v59  ;;  %1516 = vpow2.f32 %v1188_v53 }
 0x138   : > { %v1499_v57 = vpop.eup %1498  ;;  %v1249_v28 = vpack.c.bf16 %v866_v5, %v866_v5  ;;  %v871_v60 = vmul.f32 %v1497_v56, %v1757_v62  ;;  %1518 = vpow2.f32 %v1204_v40 }
 0x139   : > { %v1501_v33 = vpop.eup %1500  ;;  %1045 = vst.msk [vmem:[%s1805_s23 + $0x5c] sm:$0xf] %vm1021_vm0, %v1267_v36  ;;  %v1265_v10 = vpack.c.bf16 %v882_v9, %v882_v9  ;;  %v887_v41 = vmul.f32 %v1499_v57, %v1761_v6  ;;  %1520 = vpow2.f32 %v1191_v47 }
 0x13a   : > { %v1503_v59 = vpop.eup %1502  ;;  %1027 = vst.msk [vmem:[%s1805_s23 + $0x14] sm:$0xf] %vm1021_vm0, %v1249_v28  ;;  %v1254_v63 = vpack.c.bf16 %v871_v60, %v871_v60  ;;  %v869_v2 = vmul.f32 %v1501_v33, %v1764_v7  ;;  %1522 = vpow2.f32 %v1207_v55 }
 0x13b   : > { %v1505_v62 = vpop.eup %1504  ;;  %1043 = vst.msk [vmem:[%s1805_s23 + $0x54] sm:$0xf] %vm1021_vm0, %v1265_v10  ;;  %v1270_v13 = vpack.c.bf16 %v887_v41, %v887_v41  ;;  %v885_v3 = vmul.f32 %v1503_v59, %v1771_v15  ;;  %1524 = vpow2.f32 %v1189_v26 }
 0x13c   : > { %v1507_v12 = vpop.eup %1506  ;;  %1032 = vst.msk [vmem:[%s1805_s23 + $0x28] sm:$0xf] %vm1021_vm0, %v1254_v63  ;;  %v1252_v6 = vpack.c.bf16 %v869_v2, %v869_v2  ;;  %v872_v37 = vmul.f32 %v1505_v62, %v1786_v31  ;;  %1526 = vpow2.f32 %v1205_v61 }
 0x13d   : > { %v1509_v14 = vpop.eup %1508  ;;  %1048 = vst.msk [vmem:[%s1805_s23 + $0x68] sm:$0xf] %vm1021_vm0, %v1270_v13  ;;  %v1268_v7 = vpack.c.bf16 %v885_v3, %v885_v3  ;;  %v888_v0 = vmul.f32 %v1507_v12, %v1792_v45 }
 0x13e   : > { %v1511_v16 = vpop.eup %1510  ;;  %1030 = vst.msk [vmem:[%s1805_s23 + $0x20] sm:$0xf] %vm1021_vm0, %v1252_v6  ;;  %v1255_v15 = vpack.c.bf16 %v872_v37, %v872_v37  ;;  %v870_v54 = vmul.f32 %v1509_v14, %v1796_v50 }
 0x13f   : > { %v1513_v43 = vpop.eup %1512  ;;  %1046 = vst.msk [vmem:[%s1805_s23 + $0x60] sm:$0xf] %vm1021_vm0, %v1268_v7  ;;  %v1271_v31 = vpack.c.bf16 %v888_v0, %v888_v0  ;;  %v886_v1 = vmul.f32 %v1511_v16, %v1820_v42 }
 0x140   : > { %v1515_v19 = vpop.eup %1514  ;;  %1033 = vst.msk [vmem:[%s1805_s23 + $0x2c] sm:$0xf] %vm1021_vm0, %v1255_v15  ;;  %v1253_v48 = vpack.c.bf16 %v870_v54, %v870_v54  ;;  %v875_v45 = vmul.f32 %v1513_v43, %v1826_v58 }
 0x141   : > { %v1517_v20 = vpop.eup %1516  ;;  %1049 = vst.msk [vmem:[%s1805_s23 + $0x6c] sm:$0xf] %vm1021_vm0, %v1271_v31  ;;  %v1269_v8 = vpack.c.bf16 %v886_v1, %v886_v1  ;;  %v891_v50 = vmul.f32 %v1515_v19, %v1832_v21 }
 0x142   : > { %v1519_v11 = vpop.eup %1518  ;;  %1031 = vst.msk [vmem:[%s1805_s23 + $0x24] sm:$0xf] %vm1021_vm0, %v1253_v48  ;;  %v1258_v49 = vpack.c.bf16 %v875_v45, %v875_v45  ;;  %v777_v27 = vadd.f32 1.0, %v1517_v20 }
 0x143   : > { %v1521_v42 = vpop.eup %1520  ;;  %1047 = vst.msk [vmem:[%s1805_s23 + $0x64] sm:$0xf] %vm1021_vm0, %v1269_v8  ;;  %v1274_v29 = vpack.c.bf16 %v891_v50, %v891_v50  ;;  %v793_v30 = vadd.f32 1.0, %v1519_v11 }
 0x144   : > { %v1523_v18 = vpop.eup %1522  ;;  %1036 = vst.msk [vmem:[%s1805_s23 + $0x38] sm:$0xf] %vm1021_vm0, %v1258_v49  ;;  %1528 = vrcp.f32 %v777_v27  ;;  %v780_v58 = vadd.f32 1.0, %v1521_v42 }
 0x145   : > { %v1525_v52 = vpop.eup %1524  ;;  %1052 = vst.msk [vmem:[%s1805_s23 + $0x78] sm:$0xf] %vm1021_vm0, %v1274_v29  ;;  %1530 = vrcp.f32 %v793_v30  ;;  %v796_v21 = vadd.f32 1.0, %v1523_v18 }
 0x146   : > { %v1527_v34 = vpop.eup %1526  ;;  %1532 = vrcp.f32 %v780_v58  ;;  %v778_v38 = vadd.f32 1.0, %v1525_v52 }
 0x147   : > { %1534 = vrcp.f32 %v796_v21  ;;  %v794_v39 = vadd.f32 1.0, %v1527_v34 }
 0x148   : > { %1536 = vrcp.f32 %v778_v38 }
 0x149   : > { %1538 = vrcp.f32 %v794_v39 }
 0x14e   : > { %v1529_v53 = vpop.eup %1528 }
 0x14f   : > { %v1531_v24 = vpop.eup %1530  ;;  %v873_v25 = vmul.f32 %v1529_v53, %v1873_v22 }
 0x150   : > { %v1533_v40 = vpop.eup %1532  ;;  %v889_v4 = vmul.f32 %v1531_v24, %v1878_v17 }
 0x151   : > { %v1535_v44 = vpop.eup %1534  ;;  %v1256_v47 = vpack.c.bf16 %v873_v25, %v873_v25  ;;  %v876_v51 = vmul.f32 %v1533_v40, %v1883_v32 }
 0x152   : > { %v1537_v5 = vpop.eup %1536  ;;  %v1272_v55 = vpack.c.bf16 %v889_v4, %v889_v4  ;;  %v892_v56 = vmul.f32 %v1535_v44, %v1886_v23 }
 0x153   : > { %v1539_v36 = vpop.eup %1538  ;;  %1034 = vst.msk [vmem:[%s1805_s23 + $0x30] sm:$0xf] %vm1021_vm0, %v1256_v47  ;;  %v1259_v9 = vpack.c.bf16 %v876_v51, %v876_v51  ;;  %v874_v22 = vmul.f32 %v1537_v5, %v1890_v35 }
 0x154   : > { %1050 = vst.msk [vmem:[%s1805_s23 + $0x70] sm:$0xf] %vm1021_vm0, %v1272_v55  ;;  %v1275_v17 = vpack.c.bf16 %v892_v56, %v892_v56  ;;  %v890_v26 = vmul.f32 %v1539_v36, %v1894_v46 }
 0x155   : > { %1037 = vst.msk [vmem:[%s1805_s23 + $0x3c] sm:$0xf] %vm1021_vm0, %v1259_v9  ;;  %v1257_v57 = vpack.c.bf16 %v874_v22, %v874_v22 }
 0x156   : > { %1053 = vst.msk [vmem:[%s1805_s23 + $0x7c] sm:$0xf] %vm1021_vm0, %v1275_v17  ;;  %v1273_v32 = vpack.c.bf16 %v890_v26, %v890_v26 }
 0x157   : > { %1035 = vst.msk [vmem:[%s1805_s23 + $0x34] sm:$0xf] %vm1021_vm0, %v1257_v57 }
 0x158   : > { %1051 = vst.msk [vmem:[%s1805_s23 + $0x74] sm:$0xf] %vm1021_vm0, %v1273_v32 }
 0x159 PF: > { %s14_s17 = sadd.s32 1, %s1562_s17   ;;  %s1971_s15 = smov %s1558_s16 }
 0x15a   : > { %p11_p5 = scmp.ge.s32.totalorder %s14_s17, 4   ;;  %s1972_s16 = smov %s1974_s18 }
 0x15c   :  { %13 = sbr.rel (!%p11_p5) target bundleno = 2 (0x2), region = 66 }

// kernel: model_forward.4
= control target key start
LH: loop header
LB: loop body
LE: loop exit
PB: predicated region body
PF: predicated region fallthrough
CT: control target
= control target key end

     0   :  { %s1309_s24 = smov 0   ;;  %s1311_s25 = smov 0   ;;  %s1480_s0 = inlined_call_operand.vmem [shape: bf16[2,64,256], index: 0, kind: input, shape index: {}]   ;;  %s1481_s1 = inlined_call_operand.vmem [shape: bf16[256,32], index: 1, kind: input, shape index: {}]   ;;  %s1482_s2 = inlined_call_operand.vmem [shape: f32[1,32], index: 2, kind: input, shape index: {}]   ;;  %s1483_s3 = inlined_call_operand.vmem [shape: f32[1,32], index: 3, kind: input, shape index: {}]   ;;  %s1484_s4 = inlined_call_operand.vmem [shape: bf16[32,39], index: 4, kind: input, shape index: {}]   ;;  %s1485_s5 = inlined_call_operand.vmem [shape: f32[1,39], index: 5, kind: input, shape index: {}]   ;;  %s1486_s6 = inlined_call_operand.vmem [shape: bf16[2,64,32], index: 6, kind: output, shape index: {0}]   ;;  %s1487_s7 = inlined_call_operand.vmem [shape: bf16[2,64,39], index: 7, kind: output, shape index: {1}]  }
   0x1   :  { %s1313_s26 = smov 0  }
   0x2 LB: > { %s30_s27 = sadd.s32 1, %s1263_s25  ;;  %p1000_p0 = scmp.ge.s32.totalorder %s1267_s26, 1  ;;  %s1267_s26 = sphi %s1313_s26, %s18_s26   ;;  %s1263_s25 = sphi %s1311_s25, %s1489_s25   ;;  %s1259_s24 = sphi %s1309_s24, %s1488_s24  }
   0x3   : > { %p32_p1 = scmp.ge.s32.totalorder %s30_s27, 2  ;;  %p264_p2 = scmp.lt.s32.totalorder %s1267_s26, 3 }
   0x5   : > { %s1491_s27 = smov (%p32_p1, %s30_s27), 0  ;;  %p265_p3 = pnand %p1000_p0, %p264_p2 }
   0x6   : > { %v1183_v0 = vld [vmem:[%s1481_s1 + $0x40] sm:$0xff] (!%p265_p3)   ;;  %v1185_v2 = vld [vmem:[%s1481_s1 + $0x48] sm:$0xff] (!%p265_p3)   ;;  %p315_p4 = scmp.lt.s32.totalorder (!%p265_p3), %s1259_s24, 1  ;;  %v1187_v4 = vld [vmem:[%s1481_s1 + $0x50] sm:$0xff] (!%p265_p3)   ;;  %vm705_vm0 = vcmask (!%p265_p3), 257024   ;;  %vm737_vm1 = vcmask (!%p265_p3), 261120  }
   0x7   : > { %268 = sbr.rel (%p265_p3) target bundleno = 527 (0x20f), region = 44  ;;  %v1184_v1 = vld [vmem:[%s1481_s1] sm:$0xff] (!%p265_p3)   ;;  %1085 = vmatprep.subr.bf16.mxu0 (!%p265_p3), %v1183_v0  ;;  %1143 = vmatprep.subr.bf16.mxu1 (!%p265_p3), %v1183_v0  ;;  %v1186_v3 = vld [vmem:[%s1481_s1 + $0x8] sm:$0xff] (!%p265_p3)   ;;  %v1188_v5 = vld [vmem:[%s1481_s1 + $0x10] sm:$0xff] (!%p265_p3)   ;;  %vm847_vm2 = vcmask (!%p265_p3), 314368  }
   0x8   : > { %1086 = vmatpush3.bf16.msra.mxu0 (!%p265_p3), %v1184_v1  ;;  %1151 = vmatpush3.bf16.msra.mxu1 (!%p265_p3), %v1184_v1  ;;  %v1189_v6 = vld [vmem:[%s1481_s1 + $0x58] sm:$0xff] (!%p265_p3)   ;;  %v1191_v8 = vld [vmem:[%s1481_s1 + $0x60] sm:$0xff] (!%p265_p3)   ;;  %v1193_v10 = vld [vmem:[%s1481_s1 + $0x68] sm:$0xff] (!%p265_p3)  }
   0x9   : > { %1087 = vmatprep.subr.bf16.mxu0 (!%p265_p3), %v1185_v2  ;;  %1144 = vmatprep.subr.bf16.mxu1 (!%p265_p3), %v1185_v2  ;;  %v1190_v7 = vld [vmem:[%s1481_s1 + $0x18] sm:$0xff] (!%p265_p3)   ;;  %v1192_v9 = vld [vmem:[%s1481_s1 + $0x20] sm:$0xff] (!%p265_p3)   ;;  %v1194_v13 = vld [vmem:[%s1481_s1 + $0x28] sm:$0xff] (!%p265_p3)  }
   0xa   : > { %v1195_v14 = vld [vmem:[%s1481_s1 + $0x70] sm:$0xff] (!%p265_p3)   ;;  %v1197_v16 = vld [vmem:[%s1481_s1 + $0x78] sm:$0xff] (!%p265_p3)   ;;  %v1211_v24 = vld [vmem:[%s1484_s4] sm:$0xff] (!%p265_p3)  }
   0xb   : > { %v1196_v15 = vld [vmem:[%s1481_s1 + $0x30] sm:$0xff] (!%p265_p3)   ;;  %v1198_v17 = vld [vmem:[%s1481_s1 + $0x38] sm:$0xff] (!%p265_p3)   ;;  %v1212_v25 = vld [vmem:[%s1484_s4 + $0x8] sm:$0xff] (!%p265_p3)  }
   0xc   : > { %1088 = vmatpush3.bf16.msra.mxu0 (!%p265_p3), %v1186_v3  ;;  %1152 = vmatpush3.bf16.msra.mxu1 (!%p265_p3), %v1186_v3  ;;  %v1031_v29 = vld [vmem:[%s1482_s2] ss:$0 sm:$0xff] (!%p265_p3) }
   0xd   : > { %1089 = vmatprep.subr.bf16.mxu0 (!%p265_p3), %v1187_v4  ;;  %1145 = vmatprep.subr.bf16.mxu1 (!%p265_p3), %v1187_v4  ;;  %v1032_v35 = vld [vmem:[%s1483_s3] ss:$0 sm:$0xff] (!%p265_p3) }
   0xe   : > { %s1493_s24 = smov (!%p315_p4, %s1259_s24), 1 }
   0xf   : > { %s1066_s21 = sshll.u32 %s1493_s24, 6  ;;  %s1067_s11 = sshll.u32 %s1493_s24, 5 }
  0x10   : > { %1090 = vmatpush3.bf16.msra.mxu0 %v1188_v5  ;;  %1153 = vmatpush3.bf16.msra.mxu1 %v1188_v5  ;;  %s1360_s30 = scalar_lea.vmem %s1480_s0, %s1066_s21  ;;  %s1428_s14 = scalar_lea.vmem %s1486_s6, %s1067_s11 }
  0x11   : > { %1091 = vmatprep.subr.bf16.mxu0 %v1189_v6  ;;  %1146 = vmatprep.subr.bf16.mxu1 %v1189_v6  ;;  %v1201_v11 = vld [vmem:[%s1360_s30 + $0x4] ss:$8 sps:$4 sm:$0xff]   ;;  %v1204_v12 = vld [vmem:[%s1360_s30 + $0x34] ss:$8 sps:$4 sm:$0xff]   ;;  %v1199_v18 = vld [vmem:[%s1360_s30] ss:$8 sps:$4 sm:$0xff]   ;;  %s343_s19 = scalar_lea.vmem %s1487_s7, %s1067_s11 }
  0x12   : > { %554 = vmatprep.mubr.bf16.mxu0 %v1201_v11  ;;  %578 = vmatprep.mubr.bf16.mxu1 %v1204_v12  ;;  %v1202_v19 = vld [vmem:[%s1360_s30 + $0x30] ss:$8 sps:$4 sm:$0xff]   ;;  %v1205_v20 = vld [vmem:[%s1360_s30 + $0x14] ss:$8 sps:$4 sm:$0xff]   ;;  %v1208_v22 = vld [vmem:[%s1360_s30 + $0x24] ss:$8 sps:$4 sm:$0xff]  }
  0x13   : > { %v1207_v21 = vld [vmem:[%s1360_s30 + $0x10] ss:$8 sps:$4 sm:$0xff]   ;;  %v1210_v23 = vld [vmem:[%s1360_s30 + $0x20] ss:$8 sps:$4 sm:$0xff]  }
  0x14   : > { %1092 = vmatpush3.bf16.msra.mxu0 %v1190_v7  ;;  %1154 = vmatpush3.bf16.msra.mxu1 %v1190_v7 }
  0x15   : > { %1093 = vmatprep.subr.bf16.mxu0 %v1191_v8  ;;  %1147 = vmatprep.subr.bf16.mxu1 %v1191_v8 }
  0x18   : > { %1094 = vmatpush3.bf16.msra.mxu0 %v1192_v9  ;;  %1155 = vmatpush3.bf16.msra.mxu1 %v1192_v9 }
  0x19   : > { %1095 = vmatprep.subr.bf16.mxu0 %v1193_v10  ;;  %1148 = vmatprep.subr.bf16.mxu1 %v1193_v10 }
  0x1c   : > { %1096 = vmatpush3.bf16.msra.mxu0 %v1194_v13  ;;  %1156 = vmatpush3.bf16.msra.mxu1 %v1194_v13 }
  0x1d   : > { %1097 = vmatprep.subr.bf16.mxu0 %v1195_v14  ;;  %1149 = vmatprep.subr.bf16.mxu1 %v1195_v14 }
  0x20   : > { %1098 = vmatpush3.bf16.msra.mxu0 %v1196_v15  ;;  %1157 = vmatpush3.bf16.msra.mxu1 %v1196_v15 }
  0x21   : > { %1099 = vmatprep.subr.bf16.mxu0 %v1197_v16  ;;  %1150 = vmatprep.subr.bf16.mxu1 %v1197_v16 }
  0x24   : > { %1100 = vmatpush3.bf16.msra.mxu0 %v1198_v17  ;;  %1158 = vmatpush3.bf16.msra.mxu1 %v1198_v17 }
  0x25   : > { %1131 = vmatprep.subr.bf16.mxu1 %v1211_v24 }
  0x27   : > { %555 = vmatmul.mubr.bf16.vlgmr.msra.gmra.mrb[0].mxu0 %v1199_v18  ;;  %579 = vmatmul.mubr.bf16.vlgmr.msra.gmra.mrb[0].mxu1 %v1202_v19 }
  0x28   : > { %562 = vmatprep.mubr.bf16.mxu0 %v1205_v20  ;;  %1132 = vmatpush3.bf16.msra.mxu1 %v1211_v24 }
  0x29   : > { %1133 = vmatprep.subr.bf16.mxu1 %v1212_v25 }
  0x2c   : > { %1134 = vmatpush3.bf16.msra.mxu1 %v1212_v25 }
  0x2f   : > { %563 = vmatmul.mubr.bf16.gmra.mrb[4].mxu0 %v1207_v21 }
  0x30   : > { %570 = vmatprep.mubr.bf16.mxu0 %v1208_v22 }
  0x37   : > { %571 = vmatmul.mubr.bf16.gmra.mrb[8].mxu0 %v1210_v23 }
  0xfa   : > { %v1101_v26 = vpop.f32.mrb[0].mxu0  ;;  %v1119_v27 = vpop.f32.mrb[0].mxu1 }
  0xfb   : > { %v1102_v28 = vpop.f32.mrb[1].mxu0  ;;  %v1120_v30 = vpop.f32.mrb[1].mxu1 }
  0xfc   : > { %v1103_v31 = vadd.f32 %v1102_v28, %v1101_v26  ;;  %v1121_v32 = vadd.f32 %v1120_v30, %v1119_v27  ;;  %v1104_v33 = vpop.f32.mrb[2].mxu0  ;;  %v1122_v34 = vpop.f32.mrb[2].mxu1 }
  0xfd   : > { %v1105_v36 = vpop.f32.mrb[3].mxu0  ;;  %v1123_v37 = vpop.f32.mrb[3].mxu1 }
  0xfe   : > { %v594_v38 = vmul.f32 %v1103_v31, %v1031_v29  ;;  %v600_v39 = vmul.f32 %v1121_v32, %v1031_v29  ;;  %v1106_v40 = vadd.f32 %v1105_v36, %v1104_v33  ;;  %v1124_v41 = vadd.f32 %v1123_v37, %v1122_v34 }
 0x100   : > { %v1403_v42 = vadd.f32 %v1032_v35, %v594_v38  ;;  %v1405_v43 = vadd.f32 %v1032_v35, %v600_v39  ;;  %v595_v44 = vmul.f32 %v1106_v40, %v1031_v29  ;;  %v601_v45 = vmul.f32 %v1124_v41, %v1031_v29 }
 0x102   : > { %v1033_v46 = vmul.f32 -1.442695, %v1403_v42  ;;  %v1039_v47 = vmul.f32 -1.442695, %v1405_v43  ;;  %v1409_v48 = vadd.f32 %v1032_v35, %v595_v44  ;;  %v1411_v49 = vadd.f32 %v1032_v35, %v601_v45  ;;  %v1107_v50 = vpop.f32.mrb[4].mxu0 }
 0x103   : > { %v1108_v51 = vpop.f32.mrb[5].mxu0 }
 0x104   : > { %1213 = vpow2.f32 %v1033_v46  ;;  %v1034_v52 = vmul.f32 -1.442695, %v1409_v48  ;;  %v1040_v53 = vmul.f32 -1.442695, %v1411_v49  ;;  %v1109_v54 = vadd.f32 %v1108_v51, %v1107_v50  ;;  %v1110_v55 = vpop.f32.mrb[6].mxu0 }
 0x105   : > { %1215 = vpow2.f32 %v1039_v47  ;;  %v1111_v56 = vpop.f32.mrb[7].mxu0 }
 0x106   : > { %1217 = vpow2.f32 %v1034_v52  ;;  %v596_v57 = vmul.f32 %v1109_v54, %v1031_v29  ;;  %v1112_v58 = vadd.f32 %v1111_v56, %v1110_v55  ;;  %v1049_v56 = vld [vmem:[%s1485_s5] ss:$0 sm:$0xff] }
 0x107   : > { %1219 = vpow2.f32 %v1040_v53 }
 0x108   : > { %v1415_v59 = vadd.f32 %v1032_v35, %v596_v57  ;;  %v597_v60 = vmul.f32 %v1112_v58, %v1031_v29 }
 0x10a   : > { %v1035_v61 = vmul.f32 -1.442695, %v1415_v59  ;;  %v1418_v62 = vadd.f32 %v1032_v35, %v597_v60  ;;  %v1113_v63 = vpop.f32.mrb[8].mxu0 }
 0x10b   : > { %v1114_v0 = vpop.f32.mrb[9].mxu0 }
 0x10c   : > { %1221 = vpow2.f32 %v1035_v61  ;;  %v1036_v1 = vmul.f32 -1.442695, %v1418_v62  ;;  %v1115_v2 = vadd.f32 %v1114_v0, %v1113_v63  ;;  %v1116_v3 = vpop.f32.mrb[10].mxu0 }
 0x10d   : > { %v1117_v4 = vpop.f32.mrb[11].mxu0 }
 0x10e   : > { %v1214_v5 = vpop.eup %1213  ;;  %1223 = vpow2.f32 %v1036_v1  ;;  %v598_v6 = vmul.f32 %v1115_v2, %v1031_v29  ;;  %v1118_v7 = vadd.f32 %v1117_v4, %v1116_v3 }
 0x10f   : > { %v1216_v8 = vpop.eup %1215  ;;  %v641_v9 = vadd.f32 1.0, %v1214_v5 }
 0x110   : > { %v1218_v10 = vpop.eup %1217  ;;  %v647_v11 = vadd.f32 1.0, %v1216_v8  ;;  %v613_v12 = vadd.f32 %v1032_v35, %v598_v6  ;;  %v599_v13 = vmul.f32 %v1118_v7, %v1031_v29 }
 0x111   : > { %v1220_v14 = vpop.eup %1219  ;;  %1225 = vrcp.f32 %v641_v9  ;;  %v642_v15 = vadd.f32 1.0, %v1218_v10 }
 0x112   : > { %1227 = vrcp.f32 %v647_v11  ;;  %v648_v16 = vadd.f32 1.0, %v1220_v14  ;;  %v1037_v17 = vmul.f32 -1.442695, %v613_v12  ;;  %v614_v18 = vadd.f32 %v1032_v35, %v599_v13 }
 0x113   : > { %1229 = vrcp.f32 %v642_v15 }
 0x114   : > { %1231 = vrcp.f32 %v648_v16  ;;  %v1038_v19 = vmul.f32 -1.442695, %v614_v18 }
 0x115   : > { %1233 = vpow2.f32 %v1037_v17 }
 0x116   : > { %v1222_v20 = vpop.eup %1221  ;;  %1235 = vpow2.f32 %v1038_v19 }
 0x117   : > { %v643_v21 = vadd.f32 1.0, %v1222_v20 }
 0x118   : > { %v1224_v22 = vpop.eup %1223 }
 0x119   : > { %1237 = vrcp.f32 %v643_v21  ;;  %v644_v23 = vadd.f32 1.0, %v1224_v22 }
 0x11b   : > { %v1226_v24 = vpop.eup %1225  ;;  %1239 = vrcp.f32 %v644_v23 }
 0x11c   : > { %v1228_v25 = vpop.eup %1227  ;;  %v665_v26 = vmul.f32 %v1226_v24, %v1403_v42 }
 0x11d   : > { %v1230_v27 = vpop.eup %1229  ;;  %v671_v28 = vmul.f32 %v1228_v25, %v1405_v43 }
 0x11e   : > { %v1232_v29 = vpop.eup %1231  ;;  %v1069_v30 = vpack.c.bf16 %v665_v26, %v665_v26  ;;  %v666_v31 = vmul.f32 %v1230_v27, %v1409_v48 }
 0x11f   : > { %v1234_v32 = vpop.eup %1233  ;;  %v1075_v33 = vpack.c.bf16 %v671_v28, %v671_v28  ;;  %v672_v34 = vmul.f32 %v1232_v29, %v1411_v49 }
 0x120   : > { %v1236_v35 = vpop.eup %1235  ;;  %706 = vst.msk [vmem:[%s1428_s14] sm:$0xf] %vm705_vm0, %v1069_v30  ;;  %v1070_v36 = vpack.c.bf16 %v666_v31, %v666_v31  ;;  %v645_v37 = vadd.f32 1.0, %v1234_v32  ;;  %v673_v38 = vpack.c.bf16 %v666_v31, %v665_v26 }
 0x121   : > { %712 = vst.msk [vmem:[%s1428_s14 + $0x18] sm:$0xf] %vm705_vm0, %v1075_v33  ;;  %v1076_v39 = vpack.c.bf16 %v672_v34, %v672_v34  ;;  %v646_v40 = vadd.f32 1.0, %v1236_v35  ;;  %v676_v41 = vpack.c.bf16 %v672_v34, %v671_v28 }
 0x122   : > { %707 = vst.msk [vmem:[%s1428_s14 + $0x4] sm:$0xf] %vm705_vm0, %v1070_v36  ;;  %1241 = vrcp.f32 %v645_v37  ;;  %1135 = vmatprep.mubr.msk.bf16.mxu1 %vm737_vm1, %v673_v38 }
 0x123   : > { %v1238_v42 = vpop.eup %1237  ;;  %713 = vst.msk [vmem:[%s1428_s14 + $0x1c] sm:$0xf] %vm705_vm0, %v1076_v39  ;;  %1243 = vrcp.f32 %v646_v40 }
 0x124   : > { %v667_v43 = vmul.f32 %v1238_v42, %v1415_v59 }
 0x125   : > { %v1240_v44 = vpop.eup %1239 }
 0x126   : > { %v1071_v45 = vpack.c.bf16 %v667_v43, %v667_v43  ;;  %v668_v46 = vmul.f32 %v1240_v44, %v1418_v62 }
 0x128   : > { %708 = vst.msk [vmem:[%s1428_s14 + $0x8] sm:$0xf] %vm705_vm0, %v1071_v45  ;;  %v674_v47 = vpack.c.bf16 %v668_v46, %v667_v43  ;;  %v1072_v48 = vpack.c.bf16 %v668_v46, %v668_v46 }
 0x12a   : > { %709 = vst.msk [vmem:[%s1428_s14 + $0xc] sm:$0xf] %vm705_vm0, %v1072_v48  ;;  %1136 = vmatmul.mubr.msk.bf16.vlgmr.msra.gmra.mrb[4].mxu1 %vm737_vm1, %v674_v47 }
 0x12c   : > { %v1242_v49 = vpop.eup %1241 }
 0x12d   : > { %v1244_v50 = vpop.eup %1243  ;;  %v669_v51 = vmul.f32 %v1242_v49, %v613_v12 }
 0x12e   : > { %v670_v52 = vmul.f32 %v1244_v50, %v614_v18 }
 0x12f   : > { %v1073_v53 = vpack.c.bf16 %v669_v51, %v669_v51 }
 0x130   : > { %v1074_v54 = vpack.c.bf16 %v670_v52, %v670_v52  ;;  %v675_v55 = vpack.c.bf16 %v670_v52, %v669_v51 }
 0x131   : > { %710 = vst.msk [vmem:[%s1428_s14 + $0x10] sm:$0xf] %vm705_vm0, %v1073_v53 }
 0x132   : > { %711 = vst.msk [vmem:[%s1428_s14 + $0x14] sm:$0xf] %vm705_vm0, %v1074_v54  ;;  %1139 = vmatprep.mubr.msk.bf16.mxu1 %vm737_vm1, %v675_v55 }
 0x133   : > { %1140 = vmatmul.mubr.msk.bf16.gmra.mrb[8].mxu1 %vm737_vm1, %v676_v41 }
 0x1fd   : > { %v1137_v57 = vpop.f32.mrb[4].mxu1 }
 0x1fe   : > { %v793_v58 = vadd.f32 %v1137_v57, %v1049_v56  ;;  %v784_v59 = vpop.f32.mrb[5].mxu1 }
 0x1ff   : > { %v785_v60 = vadd.f32 %v1049_v56, %v784_v59  ;;  %v1138_v61 = vpop.f32.mrb[6].mxu1 }
 0x200   : > { %v1079_v62 = vpack.c.bf16 %v793_v58, %v793_v58  ;;  %v796_v63 = vadd.f32 %v1138_v61, %v1049_v56  ;;  %v787_v0 = vpop.f32.mrb[7].mxu1 }
 0x201   : > { %v1077_v1 = vpack.c.bf16 %v785_v60, %v785_v60  ;;  %v788_v2 = vadd.f32 %v1049_v56, %v787_v0 }
 0x202   : > { %850 = vst.msk [vmem:[%s343_s19 + $0x8] sm:$0xf] %vm847_vm2, %v1079_v62  ;;  %v1080_v3 = vpack.c.bf16 %v796_v63, %v796_v63 }
 0x203   : > { %848 = vst.msk [vmem:[%s343_s19] sm:$0xf] %vm847_vm2, %v1077_v1  ;;  %v1078_v4 = vpack.c.bf16 %v788_v2, %v788_v2 }
 0x204   : > { %851 = vst.msk [vmem:[%s343_s19 + $0xc] sm:$0xf] %vm847_vm2, %v1080_v3 }
 0x205   : > { %849 = vst.msk [vmem:[%s343_s19 + $0x4] sm:$0xf] %vm847_vm2, %v1078_v4 }
 0x206   : > { %v1141_v5 = vpop.f32.mrb[8].mxu1 }
 0x207   : > { %v809_v6 = vadd.f32 %v1141_v5, %v1049_v56  ;;  %v800_v7 = vpop.f32.mrb[9].mxu1 }
 0x208   : > { %v801_v8 = vadd.f32 %v1049_v56, %v800_v7  ;;  %v1142_v9 = vpop.f32.mrb[10].mxu1 }
 0x209   : > { %v1083_v10 = vpack.c.bf16 %v809_v6, %v809_v6  ;;  %v812_v11 = vadd.f32 %v1142_v9, %v1049_v56  ;;  %v803_v12 = vpop.f32.mrb[11].mxu1 }
 0x20a   : > { %v1081_v13 = vpack.c.bf16 %v801_v8, %v801_v8  ;;  %v804_v14 = vadd.f32 %v1049_v56, %v803_v12 }
 0x20b   : > { %854 = vst.msk [vmem:[%s343_s19 + $0x18] sm:$0xf] %vm847_vm2, %v1083_v10  ;;  %v1084_v15 = vpack.c.bf16 %v812_v11, %v812_v11 }
 0x20c   : > { %852 = vst.msk [vmem:[%s343_s19 + $0x10] sm:$0xf] %vm847_vm2, %v1081_v13  ;;  %v1082_v16 = vpack.c.bf16 %v804_v14, %v804_v14 }
 0x20d   : > { %855 = vst.msk [vmem:[%s343_s19 + $0x1c] sm:$0xf] %vm847_vm2, %v1084_v15 }
 0x20e   : > { %853 = vst.msk [vmem:[%s343_s19 + $0x14] sm:$0xf] %vm847_vm2, %v1082_v16 }
 0x20f PF: > { %s18_s26 = sadd.s32 1, %s1267_s26   ;;  %s1488_s24 = smov %s1263_s25 }
 0x210   : > { %p15_p5 = scmp.ge.s32.totalorder %s18_s26, 4   ;;  %s1489_s25 = smov %s1491_s27 }
 0x212   :  { %17 = sbr.rel (!%p15_p5) target bundleno = 2 (0x2), region = 86 }

// kernel: model_forward.5
= control target key start
LH: loop header
LB: loop body
LE: loop exit
PB: predicated region body
PF: predicated region fallthrough
CT: control target
= control target key end

     0   :  { %s1055_s21 = smov 0   ;;  %s1057_s22 = smov 0   ;;  %s1205_s0 = inlined_call_operand.vmem [shape: bf16[2,16,384], index: 0, kind: input, shape index: {}]   ;;  %s1206_s1 = inlined_call_operand.vmem [shape: bf16[384,64], index: 1, kind: input, shape index: {}]   ;;  %s1207_s2 = inlined_call_operand.vmem [shape: f32[1,64], index: 2, kind: input, shape index: {}]   ;;  %s1208_s3 = inlined_call_operand.vmem [shape: f32[1,64], index: 3, kind: input, shape index: {}]   ;;  %s1209_s4 = inlined_call_operand.vmem [shape: bf16[64,39], index: 4, kind: input, shape index: {}]   ;;  %s1210_s5 = inlined_call_operand.vmem [shape: f32[1,39], index: 5, kind: input, shape index: {}]   ;;  %s1211_s6 = inlined_call_operand.vmem [shape: bf16[2,16,39], index: 6, kind: output, shape index: {}]  }
   0x1   :  { %s1059_s23 = smov 0  }
   0x2 LB: > { %s28_s24 = sadd.s32 1, %s1012_s22  ;;  %p811_p0 = scmp.ge.s32.totalorder %s1016_s23, 1  ;;  %s1016_s23 = sphi %s1059_s23, %s16_s23   ;;  %s1012_s22 = sphi %s1057_s22, %s1213_s22   ;;  %s1008_s21 = sphi %s1055_s21, %s1212_s21  }
   0x3   : > { %p30_p1 = scmp.ge.s32.totalorder %s28_s24, 2  ;;  %p234_p2 = scmp.lt.s32.totalorder %s1016_s23, 3 }
   0x5   : > { %s1215_s24 = smov (%p30_p1, %s28_s24), 0  ;;  %p235_p3 = pnand %p811_p0, %p234_p2 }
   0x6   : > { %v954_v0 = vld [vmem:[%s1206_s1 + $0x40] sm:$0xff] (!%p235_p3)   ;;  %v1018_v1 = vmov (!%p235_p3), 0.0   ;;  %v957_v4 = vld [vmem:[%s1206_s1 + $0x48] sm:$0xff] (!%p235_p3)   ;;  %vm1019_vm0 = vmmov (!%p235_p3), 0   ;;  %v960_v7 = vld [vmem:[%s1206_s1 + $0x50] sm:$0xff] (!%p235_p3)   ;;  %p274_p4 = scmp.lt.s32.totalorder (!%p235_p3), %s1008_s21, 1 }
   0x7   : > { %238 = sbr.rel (%p235_p3) target bundleno = 511 (0x1ff), region = 44  ;;  %895 = vmatprep.subr.bf16.mxu1 (!%p235_p3), %v1018_v1  ;;  %v955_v2 = vld [vmem:[%s1206_s1] sm:$0xff] (!%p235_p3)   ;;  %859 = vmatprep.subr.bf16.mxu0 (!%p235_p3), %v954_v0  ;;  %v958_v5 = vld [vmem:[%s1206_s1 + $0x8] sm:$0xff] (!%p235_p3)   ;;  %v961_v8 = vld [vmem:[%s1206_s1 + $0x10] sm:$0xff] (!%p235_p3)   ;;  %vm661_vm1 = vcmask (!%p235_p3), 523264   ;;  %vm714_vm2 = vcmask (!%p235_p3), 314368  }
   0x8   : > { %v956_v3 = vld [vmem:[%s1206_s1 + $0x80] sm:$0xff] (!%p235_p3)   ;;  %860 = vmatpush3.bf16.msra.mxu0 (!%p235_p3), %v955_v2  ;;  %911 = vmatprep.mubr.msk.bf16.mxu1 (!%p235_p3), %vm1019_vm0, %v1018_v1  ;;  %v959_v6 = vld [vmem:[%s1206_s1 + $0x88] sm:$0xff] (!%p235_p3)   ;;  %v962_v9 = vld [vmem:[%s1206_s1 + $0x90] sm:$0xff] (!%p235_p3)  }
   0x9   : > { %896 = vmatpush3.bf16.msra.mxu1 (!%p235_p3), %v956_v3  ;;  %861 = vmatprep.subr.bf16.mxu0 (!%p235_p3), %v957_v4  ;;  %v963_v10 = vld [vmem:[%s1206_s1 + $0x58] sm:$0xff] (!%p235_p3)   ;;  %v966_v13 = vld [vmem:[%s1206_s1 + $0x60] sm:$0xff] (!%p235_p3)   ;;  %v969_v16 = vld [vmem:[%s1206_s1 + $0x68] sm:$0xff] (!%p235_p3)  }
   0xa   : > { %897 = vmatprep.subr.bf16.mxu1 (!%p235_p3), %v1018_v1  ;;  %v964_v11 = vld [vmem:[%s1206_s1 + $0x18] sm:$0xff] (!%p235_p3)   ;;  %v967_v14 = vld [vmem:[%s1206_s1 + $0x20] sm:$0xff] (!%p235_p3)   ;;  %v970_v17 = vld [vmem:[%s1206_s1 + $0x28] sm:$0xff] (!%p235_p3)  }
   0xb   : > { %v965_v12 = vld [vmem:[%s1206_s1 + $0x98] sm:$0xff] (!%p235_p3)   ;;  %v968_v15 = vld [vmem:[%s1206_s1 + $0xa0] sm:$0xff] (!%p235_p3)   ;;  %v971_v18 = vld [vmem:[%s1206_s1 + $0xa8] sm:$0xff] (!%p235_p3)  }
   0xc   : > { %862 = vmatpush3.bf16.msra.mxu0 (!%p235_p3), %v958_v5  ;;  %v972_v19 = vld [vmem:[%s1206_s1 + $0x70] sm:$0xff] (!%p235_p3)   ;;  %v975_v22 = vld [vmem:[%s1206_s1 + $0x78] sm:$0xff] (!%p235_p3)   ;;  %v982_v28 = vld [vmem:[%s1209_s4] sm:$0xff] (!%p235_p3)  }
   0xd   : > { %898 = vmatpush3.bf16.msra.mxu1 (!%p235_p3), %v959_v6  ;;  %863 = vmatprep.subr.bf16.mxu0 (!%p235_p3), %v960_v7  ;;  %v973_v20 = vld [vmem:[%s1206_s1 + $0x30] sm:$0xff] (!%p235_p3)   ;;  %v976_v23 = vld [vmem:[%s1206_s1 + $0x38] sm:$0xff] (!%p235_p3)   ;;  %v983_v29 = vld [vmem:[%s1209_s4 + $0x8] sm:$0xff] (!%p235_p3)  }
   0xe   : > { %899 = vmatprep.subr.bf16.mxu1 %v1018_v1  ;;  %s1217_s21 = smov (!%p274_p4, %s1008_s21), 1  ;;  %v974_v21 = vld [vmem:[%s1206_s1 + $0xb0] sm:$0xff]   ;;  %v977_v25 = vld [vmem:[%s1206_s1 + $0xb8] sm:$0xff]   ;;  %v842_v38 = vld [vmem:[%s1207_s2] ss:$0 sm:$0xff] }
   0xf   : > { %s927_s15 = smul.u32 24, %s1217_s21  ;;  %v984_v30 = vld [vmem:[%s1209_s4 + $0x10] sm:$0xff]   ;;  %v985_v31 = vld [vmem:[%s1209_s4 + $0x18] sm:$0xff]   ;;  %v843_v44 = vld [vmem:[%s1208_s3] ss:$0 sm:$0xff]  ;;  %s856_s7 = sshll.u32 %s1217_s21, 3 }
  0x10   : > { %864 = vmatpush3.bf16.msra.mxu0 %v961_v8  ;;  %v846_v61 = vld [vmem:[%s1210_s5] ss:$0 sm:$0xff]  ;;  %s292_s10 = scalar_lea.vmem %s1211_s6, %s856_s7 }
  0x11   : > { %900 = vmatpush3.bf16.msra.mxu1 %v962_v9  ;;  %865 = vmatprep.subr.bf16.mxu0 %v963_v10  ;;  %s282_s28 = scalar_lea.vmem %s1205_s0, %s927_s15 }
  0x12   : > { %901 = vmatprep.subr.bf16.mxu1 %v1018_v1  ;;  %v980_v24 = vld [vmem:[%s282_s28 + $0x4] ss:$12 sps:$4 sm:$0xff]   ;;  %v978_v26 = vld [vmem:[%s282_s28] ss:$12 sps:$4 sm:$0xff]   ;;  %v981_v27 = vld [vmem:[%s282_s28 + $0x8] ss:$12 sps:$4 sm:$0xff]  }
  0x13   : > { %539 = vmatprep.mubr.bf16.mxu0 %v980_v24 }
  0x14   : > { %866 = vmatpush3.bf16.msra.mxu0 %v964_v11 }
  0x15   : > { %902 = vmatpush3.bf16.msra.mxu1 %v965_v12  ;;  %867 = vmatprep.subr.bf16.mxu0 %v966_v13 }
  0x16   : > { %903 = vmatprep.subr.bf16.mxu1 %v1018_v1 }
  0x18   : > { %868 = vmatpush3.bf16.msra.mxu0 %v967_v14 }
  0x19   : > { %904 = vmatpush3.bf16.msra.mxu1 %v968_v15  ;;  %869 = vmatprep.subr.bf16.mxu0 %v969_v16 }
  0x1a   : > { %905 = vmatprep.subr.bf16.mxu1 %v1018_v1 }
  0x1c   : > { %870 = vmatpush3.bf16.msra.mxu0 %v970_v17 }
  0x1d   : > { %906 = vmatpush3.bf16.msra.mxu1 %v971_v18  ;;  %871 = vmatprep.subr.bf16.mxu0 %v972_v19 }
  0x1e   : > { %907 = vmatprep.subr.bf16.mxu1 %v1018_v1 }
  0x20   : > { %872 = vmatpush3.bf16.msra.mxu0 %v973_v20 }
  0x21   : > { %908 = vmatpush3.bf16.msra.mxu1 %v974_v21  ;;  %873 = vmatprep.subr.bf16.mxu0 %v975_v22 }
  0x22   : > { %909 = vmatprep.subr.bf16.mxu1 %v1018_v1 }
  0x24   : > { %874 = vmatpush3.bf16.msra.mxu0 %v976_v23 }
  0x25   : > { %910 = vmatpush3.bf16.msra.mxu1 %v977_v25  ;;  %915 = vmatprep.subr.bf16.mxu0 %v1018_v1 }
  0x27   : > { %540 = vmatmul.mubr.bf16.vlgmr.msra.gmra.mrb[0].mxu0 %v978_v26 }
  0x28   : > { %912 = vmatmul.mubr.bf16.vlgmr.msra.gmra.mrb[0].mxu1 %v981_v27  ;;  %923 = vmatprep.mubr.msk.bf16.mxu0 %vm1019_vm0, %v1018_v1 }
  0x29   : > { %916 = vmatpush3.bf16.msra.mxu0 %v982_v28 }
  0x2a   : > { %917 = vmatprep.subr.bf16.mxu0 %v1018_v1 }
  0x2d   : > { %918 = vmatpush3.bf16.msra.mxu0 %v983_v29 }
  0x2e   : > { %919 = vmatprep.subr.bf16.mxu0 %v1018_v1 }
  0x31   : > { %920 = vmatpush3.bf16.msra.mxu0 %v984_v30 }
  0x32   : > { %921 = vmatprep.subr.bf16.mxu0 %v1018_v1 }
  0x35   : > { %922 = vmatpush3.bf16.msra.mxu0 %v985_v31 }
  0xfa   : > { %v875_v32 = vpop.f32.mrb[0].mxu0 }
  0xfb   : > { %v582_v33 = vpop.f32.mrb[0].mxu1  ;;  %v876_v34 = vpop.f32.mrb[1].mxu0 }
  0xfc   : > { %v877_v35 = vadd.f32 %v876_v34, %v875_v32  ;;  %v913_v36 = vpop.f32.mrb[1].mxu1  ;;  %v878_v37 = vpop.f32.mrb[2].mxu0 }
  0xfd   : > { %v585_v39 = vpop.f32.mrb[2].mxu1  ;;  %v879_v40 = vpop.f32.mrb[3].mxu0 }
  0xfe   : > { %v583_v41 = vadd.f32 %v877_v35, %v582_v33  ;;  %v880_v42 = vadd.f32 %v879_v40, %v878_v37  ;;  %v914_v43 = vpop.f32.mrb[3].mxu1 }
 0x100   : > { %v596_v45 = vmul.f32 %v842_v38, %v583_v41  ;;  %v586_v46 = vadd.f32 %v880_v42, %v585_v39 }
 0x102   : > { %v605_v47 = vadd.f32 %v843_v44, %v596_v45  ;;  %v597_v48 = vmul.f32 %v842_v38, %v586_v46 }
 0x104   : > { %v844_v49 = vmul.f32 -1.442695, %v605_v47  ;;  %v606_v50 = vadd.f32 %v843_v44, %v597_v48 }
 0x106   : > { %986 = vpow2.f32 %v844_v49  ;;  %v845_v51 = vmul.f32 -1.442695, %v606_v50 }
 0x108   : > { %988 = vpow2.f32 %v845_v51 }
 0x110   : > { %v987_v52 = vpop.eup %986 }
 0x111   : > { %v613_v53 = vadd.f32 1.0, %v987_v52 }
 0x112   : > { %v989_v54 = vpop.eup %988 }
 0x113   : > { %990 = vrcp.f32 %v613_v53  ;;  %v614_v55 = vadd.f32 1.0, %v989_v54 }
 0x115   : > { %992 = vrcp.f32 %v614_v55 }
 0x11d   : > { %v991_v56 = vpop.eup %990 }
 0x11e   : > { %v619_v58 = vmul.f32 %v991_v56, %v605_v47 }
 0x11f   : > { %v993_v57 = vpop.eup %992 }
 0x120   : > { %v620_v59 = vmul.f32 %v993_v57, %v606_v50 }
 0x122   : > { %v621_v60 = vpack.c.bf16 %v620_v59, %v619_v58 }
 0x124   : > { %924 = vmatmul.mubr.msk.bf16.vlgmr.msra.gmra.mrb[4].mxu0 %vm661_vm1, %v621_v60 }
 0x1f7   : > { %v699_v62 = vpop.f32.mrb[4].mxu0 }
 0x1f8   : > { %v700_v63 = vadd.f32 %v846_v61, %v699_v62  ;;  %v925_v0 = vpop.f32.mrb[5].mxu0 }
 0x1f9   : > { %v702_v1 = vpop.f32.mrb[6].mxu0 }
 0x1fa   : > { %v857_v2 = vpack.c.bf16 %v700_v63, %v700_v63  ;;  %v703_v3 = vadd.f32 %v846_v61, %v702_v1  ;;  %v926_v4 = vpop.f32.mrb[7].mxu0 }
 0x1fc   : > { %715 = vst.msk [vmem:[%s292_s10] sm:$0xf] %vm714_vm2, %v857_v2  ;;  %v858_v5 = vpack.c.bf16 %v703_v3, %v703_v3 }
 0x1fe   : > { %716 = vst.msk [vmem:[%s292_s10 + $0x4] sm:$0xf] %vm714_vm2, %v858_v5 }
 0x1ff PF: > { %s16_s23 = sadd.s32 1, %s1016_s23   ;;  %s1212_s21 = smov %s1012_s22 }
 0x200   : > { %p13_p5 = scmp.ge.s32.totalorder %s16_s23, 4   ;;  %s1213_s22 = smov %s1215_s24 }
 0x202   :  { %15 = sbr.rel (!%p13_p5) target bundleno = 2 (0x2), region = 74 }

</bundles_post_ra>
